<compile_context>
chip_gen: v7x
topology: tpu7x:2x2x1
jax: 0.10.0
libtpu: 0.0.40
codegen_flags: <defaults>
</compile_context>

<pallas_src>
import functools
import math
from collections import OrderedDict

import jax
import jax.numpy as jnp
from jax.experimental import pallas as pl
from jax.experimental.pallas import tpu as pltpu


# ------------------------- fused Pallas kernel -------------------------

def _fused_encoder_kernel(pat_ref, wc_ref, bc_ref, wl_ref, bl_ref, o_ref):
    """Fused VisualCore-like forward for ALL image entries in one invocation.

    pat_ref: (N, KKp, B*HW)    bf16 im2col patches, column order b*HW + hw
    wc_ref:  (N, Cout, KKp)    bf16 conv weight in transposed-GEMM layout (zero-padded K)
    bc_ref:  (N, Cout, 1)      f32 conv bias
    wl_ref:  (N, Cout*HW, F)   bf16 linear weight, rows in NCHW flatten order co*HW+hw
    bl_ref:  (N, 1, F)         f32 linear bias
    o_ref:   (N, B, F)         f32 per-entry output features
    """
    N, B, F = o_ref.shape
    Cout = wc_ref.shape[1]
    BHW = pat_ref.shape[2]
    HW = BHW // B
    for n in range(N):  # N is tiny & static: unroll so both entries' MXU work interleaves
        # Conv as ONE transposed GEMM over the whole batch:
        #   (Cout, KKp) @ (KKp, B*HW) -> (Cout, B*HW), f32 accumulation on the MXU.
        h = jnp.dot(wc_ref[n], pat_ref[n], preferred_element_type=jnp.float32)
        h = jnp.maximum(h + bc_ref[n], 0.0)          # conv bias + ReLU (f32 epilogue)
        # Assemble the (B, Cout*HW) linear LHS with static lane-aligned slices; each
        # (Cout, HW) -> (1, Cout*HW) is one cheap sublane->lane relayout, and the row
        # order reproduces the NCHW flatten (co*HW + hw) per batch element.
        rows = [h[:, b * HW:(b + 1) * HW].reshape(1, Cout * HW) for b in range(B)]
        lhs = jnp.concatenate(rows, axis=0).astype(wl_ref.dtype)   # (B, Cout*HW) bf16
        # Linear as ONE big-K GEMM: (B, Cout*HW) @ (Cout*HW, F), f32 accumulation.
        y = jnp.dot(lhs, wl_ref[n], preferred_element_type=jnp.float32)
        # linear bias + feature ReLU, single (B, F) store per entry.
        o_ref[n] = jnp.maximum(y + bl_ref[n], 0.0)


def fused_image_cores(patches, wc, bc, wl, bl, batch):
    """Run all image-modality cores (across all groups) in one grid-less pallas_call.

    patches: (N, KKp, B*HW) bf16    wc: (N, Cout, KKp) bf16    bc: (N, Cout, 1) f32
    wl:      (N, Cout*HW, F) bf16   bl: (1, F) per entry f32
    returns  (N, B, F) float32
    """
    N = patches.shape[0]
    F = wl.shape[-1]
    # No grid: the entire (<1 MiB) working set lives in VMEM for the single invocation;
    # inputs/outputs get full-array blocks and one DMA each.
    return pl.pallas_call(
        _fused_encoder_kernel,
        out_shape=jax.ShapeDtypeStruct((N, batch, F), jnp.float32),
    )(patches, wc, bc, wl, bl)


# ------------------------- XLA-side glue (fused under jit) -------------------------

def _build_patches(imgs, k=3, pad=1, kk_pad=None):
    """imgs: (N, B, Cin, H, W) -> im2col patches (N, KKp, B*HW).

    Contraction-row ordering ci*k*k + kh*k + kw matches the conv weight reshape
    (Cout, Cin, k, k) -> (Cout, Cin*k*k); column ordering is b*HW + (h*W + w)."""
    N, B, C, H, W = imgs.shape
    xp = jnp.pad(imgs, ((0, 0), (0, 0), (0, 0), (pad, pad), (pad, pad)))
    taps = [xp[:, :, :, i:i + H, j:j + W] for i in range(k) for j in range(k)]
    pat = jnp.stack(taps, axis=3)                                  # (N, B, C, k*k, H, W)
    pat = pat.reshape(N, B, C * k * k, H * W)
    pat = pat.transpose(0, 2, 1, 3).reshape(N, C * k * k, B * H * W)
    kk = C * k * k
    if kk_pad is not None and kk_pad > kk:
        pat = jnp.pad(pat, ((0, 0), (0, kk_pad - kk), (0, 0)))     # zero-pad contraction dim
    return pat


@functools.partial(jax.jit, static_argnames=("assembly",))
def _forward_impl(wc, bc, wl, bl, imgs, lowdims, assembly):
    feats_img = None
    if imgs is not None:
        patches = _build_patches(imgs, kk_pad=wc.shape[-1]).astype(jnp.bfloat16)
        feats_img = fused_image_cores(patches, wc, bc, wl, bl, imgs.shape[1])  # (N, B, F)
    pieces = []
    for kind, idx in assembly:
        if kind == "img":
            pieces.append(feats_img[idx])
        else:
            x = lowdims[idx]
            pieces.append(x.reshape(x.shape[0], -1))   # low_dim: flatten only, no net
    return jnp.concatenate(pieces, axis=-1)


# ------------------------- encoder construction -------------------------

class ObservationGroupEncoderPallas:
    """Pallas re-implementation of ObservationGroupEncoder.forward for the concrete
    synthetic configuration described at the top of this file."""

    def __init__(self, observation_group_shapes, feature_dim=32, conv_channels=8, seed=0):
        assert isinstance(observation_group_shapes, OrderedDict)
        self.observation_group_shapes = observation_group_shapes
        self.feature_dim = feature_dim
        self.conv_channels = conv_channels

        # Traversal: groups in order, modalities in order -> final concat order.
        self._image_entries = []   # (group, modality)
        self._lowdim_entries = []  # (group, modality)
        assembly = []
        for g, mods in observation_group_shapes.items():
            for m, shp in mods.items():
                if len(shp) == 3:
                    assembly.append(("img", len(self._image_entries)))
                    self._image_entries.append((g, m))
                else:
                    assembly.append(("low", len(self._lowdim_entries)))
                    self._lowdim_entries.append((g, m))
        self._assembly = tuple(assembly)

        # All image modalities must share one input shape to be stacked into one
        # fused pallas_call (true for this synthetic config).
        img_shapes = {observation_group_shapes[g][m] for g, m in self._image_entries}
        assert len(img_shapes) <= 1, img_shapes
        # TODO(synk): heterogeneous image shapes would need one fused call per shape bucket.

        key = jax.random.PRNGKey(seed)
        wc, bc, wl, bl = [], [], [], []
        for g, m in self._image_entries:
            C, H, W = observation_group_shapes[g][m]
            kk = C * 9
            kk_pad = ((kk + 7) // 8) * 8               # 36 -> 40: unmasked sublane loads
            key, k1, k2, k3, k4 = jax.random.split(key, 5)
            conv_w = jax.random.normal(k1, (conv_channels, C, 3, 3), jnp.float32) * 0.05
            conv_b = jax.random.normal(k2, (conv_channels,), jnp.float32) * 0.05
            lin_w = jax.random.normal(k3, (conv_channels * H * W, feature_dim), jnp.float32) * 0.02
            lin_b = jax.random.normal(k4, (feature_dim,), jnp.float32) * 0.02
            # One-time parameter prep into the kernel's GEMM layouts. Mathematically
            # identical to Conv2d(NCHW, cross-correlation) + NCHW flatten + Linear,
            # modulo the deliberate bf16 operand cast (accumulation stays f32).
            wc_e = jnp.pad(conv_w.reshape(conv_channels, kk), ((0, 0), (0, kk_pad - kk)))
            wc.append(wc_e.astype(jnp.bfloat16))                       # (Cout, KKp)
            bc.append(conv_b.reshape(conv_channels, 1))                # (Cout, 1) f32
            wl.append(lin_w.astype(jnp.bfloat16))                      # (Cout*HW, F)
            bl.append(lin_b.reshape(1, feature_dim))                   # (1, F) f32
        if self._image_entries:
            self._wc = jnp.stack(wc)
            self._bc = jnp.stack(bc)
            self._wl = jnp.stack(wl)
            self._bl = jnp.stack(bl)
        else:
            self._wc = self._bc = self._wl = self._bl = None

    def __call__(self, **inputs):
        assert set(self.observation_group_shapes.keys()).issubset(inputs)
        imgs = None
        if self._image_entries:
            imgs = jnp.stack([inputs[g][m] for g, m in self._image_entries], axis=0)
        lowdims = tuple(inputs[g][m] for g, m in self._lowdim_entries)
        return _forward_impl(self._wc, self._bc, self._wl, self._bl,
                             imgs, lowdims, self._assembly)

    def output_shape(self):
        d = 0
        for g, mods in self.observation_group_shapes.items():
            for m, shp in mods.items():
                d += self.feature_dim if len(shp) == 3 else int(math.prod(shp))
        return [d]


# ------------------------------ main ------------------------------

if __name__ == "__main__":
    B = 2
    observation_group_shapes = OrderedDict(
        obs=OrderedDict(image=(4, 16, 16), proprio=(8,)),
        goal=OrderedDict(image=(4, 16, 16)),
    )
    enc = ObservationGroupEncoderPallas(observation_group_shapes, feature_dim=32, seed=0)

    key = jax.random.PRNGKey(0)
    k1, k2, k3 = jax.random.split(key, 3)
    inputs = dict(
        obs=dict(
            image=jax.random.normal(k1, (B, 4, 16, 16), jnp.float32),
            proprio=jax.random.normal(k2, (B, 8), jnp.float32),
        ),
        goal=dict(
            image=jax.random.normal(k3, (B, 4, 16, 16), jnp.float32),
        ),
    )

    out = enc(**inputs)
    out = jax.block_until_ready(out)
    assert out.shape == (B, enc.output_shape()[0]), out.shape  # (2, 72)
    assert bool(jnp.all(jnp.isfinite(out))), "non-finite output"
    print("KERNEL_OK")
</pallas_src>

<mosaic_0001>
module attributes {stable_mosaic.version = 11 : i64} {
  func.func @_fused_encoder_kernel(%arg0: memref<2x40x512xbf16, #tpu.memory_space<vmem>>, %arg1: memref<2x8x40xbf16, #tpu.memory_space<vmem>>, %arg2: memref<2x8x1xf32, #tpu.memory_space<vmem>>, %arg3: memref<2x2048x32xbf16, #tpu.memory_space<vmem>>, %arg4: memref<2x1x32xf32, #tpu.memory_space<vmem>>, %arg5: memref<2x2x32xf32, #tpu.memory_space<vmem>>) attributes {dimension_semantics = [], scalar_prefetch = 0 : i64, scratch_operands = 0 : i64, tpu.core_type = #tpu.core_type<tc>} {
    %c0 = arith.constant 0 : index
    %c0_0 = arith.constant 0 : index
    %c0_1 = arith.constant 0 : index
    %0 = vector.load %arg1[%c0, %c0_0, %c0_1] : memref<2x8x40xbf16, #tpu.memory_space<vmem>>, vector<1x8x40xbf16>
    %1 = vector.shape_cast %0 : vector<1x8x40xbf16> to vector<8x40xbf16>
    %c0_2 = arith.constant 0 : index
    %c0_3 = arith.constant 0 : index
    %c0_4 = arith.constant 0 : index
    %2 = vector.load %arg0[%c0_2, %c0_3, %c0_4] : memref<2x40x512xbf16, #tpu.memory_space<vmem>>, vector<1x40x512xbf16>
    %3 = vector.shape_cast %2 : vector<1x40x512xbf16> to vector<40x512xbf16>
    %cst = arith.constant dense<0.000000e+00> : vector<8x512xf32>
    %4 = tpu.matmul %1, %3, %cst {dimension_numbers = #tpu.dot_dimension_numbers<[1], [0], [0], [1], [0, 0, 1, 1], [], []>} : vector<8x40xbf16>, vector<40x512xbf16>, vector<8x512xf32> -> vector<8x512xf32>
    %c0_5 = arith.constant 0 : index
    %c0_6 = arith.constant 0 : index
    %c0_7 = arith.constant 0 : index
    %5 = vector.load %arg2[%c0_5, %c0_6, %c0_7] : memref<2x8x1xf32, #tpu.memory_space<vmem>>, vector<1x8x1xf32>
    %6 = vector.shape_cast %5 : vector<1x8x1xf32> to vector<8x1xf32>
    %7 = vector.broadcast %6 : vector<8x1xf32> to vector<8x512xf32>
    %8 = arith.addf %4, %7 : vector<8x512xf32>
    %cst_8 = arith.constant 0.000000e+00 : f32
    %9 = vector.broadcast %cst_8 : f32 to vector<8x512xf32>
    %10 = arith.maximumf %8, %9 : vector<8x512xf32>
    %11 = vector.extract_strided_slice %10 {offsets = [0, 0], sizes = [8, 256], strides = [1, 1]} : vector<8x512xf32> to vector<8x256xf32>
    %12 = vector.shape_cast %11 : vector<8x256xf32> to vector<1x2048xf32>
    %13 = vector.extract_strided_slice %10 {offsets = [0, 256], sizes = [8, 256], strides = [1, 1]} : vector<8x512xf32> to vector<8x256xf32>
    %14 = vector.shape_cast %13 : vector<8x256xf32> to vector<1x2048xf32>
    %15 = tpu.concatenate %12, %14 in 0 : vector<1x2048xf32>, vector<1x2048xf32> -> vector<2x2048xf32>
    %16 = arith.truncf %15 : vector<2x2048xf32> to vector<2x2048xbf16>
    %c0_9 = arith.constant 0 : index
    %c0_10 = arith.constant 0 : index
    %c0_11 = arith.constant 0 : index
    %17 = vector.load %arg3[%c0_9, %c0_10, %c0_11] : memref<2x2048x32xbf16, #tpu.memory_space<vmem>>, vector<1x2048x32xbf16>
    %18 = vector.shape_cast %17 : vector<1x2048x32xbf16> to vector<2048x32xbf16>
    %cst_12 = arith.constant dense<0.000000e+00> : vector<2x32xf32>
    %19 = tpu.matmul %16, %18, %cst_12 {dimension_numbers = #tpu.dot_dimension_numbers<[1], [0], [0], [1], [0, 0, 1, 1], [], []>} : vector<2x2048xbf16>, vector<2048x32xbf16>, vector<2x32xf32> -> vector<2x32xf32>
    %c0_13 = arith.constant 0 : index
    %c0_14 = arith.constant 0 : index
    %c0_15 = arith.constant 0 : index
    %20 = vector.load %arg4[%c0_13, %c0_14, %c0_15] : memref<2x1x32xf32, #tpu.memory_space<vmem>>, vector<1x1x32xf32>
    %21 = vector.shape_cast %20 : vector<1x1x32xf32> to vector<1x32xf32>
    %22 = vector.broadcast %21 : vector<1x32xf32> to vector<2x32xf32>
    %23 = arith.addf %19, %22 : vector<2x32xf32>
    %cst_16 = arith.constant 0.000000e+00 : f32
    %24 = vector.broadcast %cst_16 : f32 to vector<2x32xf32>
    %25 = arith.maximumf %23, %24 : vector<2x32xf32>
    %c0_17 = arith.constant 0 : index
    %c0_18 = arith.constant 0 : index
    %c0_19 = arith.constant 0 : index
    %26 = vector.load %arg5[%c0_17, %c0_18, %c0_19] : memref<2x2x32xf32, #tpu.memory_space<vmem>>, vector<1x2x32xf32>
    %27 = vector.shape_cast %26 : vector<1x2x32xf32> to vector<2x32xf32>
    %28 = vector.shape_cast %25 : vector<2x32xf32> to vector<1x2x32xf32>
    tpu.vector_store %arg5[%c0_17, %c0_18, %c0_19], %28 {strides = array<i32>} : memref<2x2x32xf32, #tpu.memory_space<vmem>>, vector<1x2x32xf32>,
    %c1 = arith.constant 1 : index
    %c0_20 = arith.constant 0 : index
    %c0_21 = arith.constant 0 : index
    %29 = vector.load %arg1[%c1, %c0_20, %c0_21] : memref<2x8x40xbf16, #tpu.memory_space<vmem>>, vector<1x8x40xbf16>
    %30 = vector.shape_cast %29 : vector<1x8x40xbf16> to vector<8x40xbf16>
    %c1_22 = arith.constant 1 : index
    %c0_23 = arith.constant 0 : index
    %c0_24 = arith.constant 0 : index
    %31 = vector.load %arg0[%c1_22, %c0_23, %c0_24] : memref<2x40x512xbf16, #tpu.memory_space<vmem>>, vector<1x40x512xbf16>
    %32 = vector.shape_cast %31 : vector<1x40x512xbf16> to vector<40x512xbf16>
    %cst_25 = arith.constant dense<0.000000e+00> : vector<8x512xf32>
    %33 = tpu.matmul %30, %32, %cst_25 {dimension_numbers = #tpu.dot_dimension_numbers<[1], [0], [0], [1], [0, 0, 1, 1], [], []>} : vector<8x40xbf16>, vector<40x512xbf16>, vector<8x512xf32> -> vector<8x512xf32>
    %c1_26 = arith.constant 1 : index
    %c0_27 = arith.constant 0 : index
    %c0_28 = arith.constant 0 : index
    %34 = vector.load %arg2[%c1_26, %c0_27, %c0_28] : memref<2x8x1xf32, #tpu.memory_space<vmem>>, vector<1x8x1xf32>
    %35 = vector.shape_cast %34 : vector<1x8x1xf32> to vector<8x1xf32>
    %36 = vector.broadcast %35 : vector<8x1xf32> to vector<8x512xf32>
    %37 = arith.addf %33, %36 : vector<8x512xf32>
    %cst_29 = arith.constant 0.000000e+00 : f32
    %38 = vector.broadcast %cst_29 : f32 to vector<8x512xf32>
    %39 = arith.maximumf %37, %38 : vector<8x512xf32>
    %40 = vector.extract_strided_slice %39 {offsets = [0, 0], sizes = [8, 256], strides = [1, 1]} : vector<8x512xf32> to vector<8x256xf32>
    %41 = vector.shape_cast %40 : vector<8x256xf32> to vector<1x2048xf32>
    %42 = vector.extract_strided_slice %39 {offsets = [0, 256], sizes = [8, 256], strides = [1, 1]} : vector<8x512xf32> to vector<8x256xf32>
    %43 = vector.shape_cast %42 : vector<8x256xf32> to vector<1x2048xf32>
    %44 = tpu.concatenate %41, %43 in 0 : vector<1x2048xf32>, vector<1x2048xf32> -> vector<2x2048xf32>
    %45 = arith.truncf %44 : vector<2x2048xf32> to vector<2x2048xbf16>
    %c1_30 = arith.constant 1 : index
    %c0_31 = arith.constant 0 : index
    %c0_32 = arith.constant 0 : index
    %46 = vector.load %arg3[%c1_30, %c0_31, %c0_32] : memref<2x2048x32xbf16, #tpu.memory_space<vmem>>, vector<1x2048x32xbf16>
    %47 = vector.shape_cast %46 : vector<1x2048x32xbf16> to vector<2048x32xbf16>
    %cst_33 = arith.constant dense<0.000000e+00> : vector<2x32xf32>
    %48 = tpu.matmul %45, %47, %cst_33 {dimension_numbers = #tpu.dot_dimension_numbers<[1], [0], [0], [1], [0, 0, 1, 1], [], []>} : vector<2x2048xbf16>, vector<2048x32xbf16>, vector<2x32xf32> -> vector<2x32xf32>
    %c1_34 = arith.constant 1 : index
    %c0_35 = arith.constant 0 : index
    %c0_36 = arith.constant 0 : index
    %49 = vector.load %arg4[%c1_34, %c0_35, %c0_36] : memref<2x1x32xf32, #tpu.memory_space<vmem>>, vector<1x1x32xf32>
    %50 = vector.shape_cast %49 : vector<1x1x32xf32> to vector<1x32xf32>
    %51 = vector.broadcast %50 : vector<1x32xf32> to vector<2x32xf32>
    %52 = arith.addf %48, %51 : vector<2x32xf32>
    %cst_37 = arith.constant 0.000000e+00 : f32
    %53 = vector.broadcast %cst_37 : f32 to vector<2x32xf32>
    %54 = arith.maximumf %52, %53 : vector<2x32xf32>
    %c1_38 = arith.constant 1 : index
    %c0_39 = arith.constant 0 : index
    %c0_40 = arith.constant 0 : index
    %55 = vector.load %arg5[%c1_38, %c0_39, %c0_40] : memref<2x2x32xf32, #tpu.memory_space<vmem>>, vector<1x2x32xf32>
    %56 = vector.shape_cast %55 : vector<1x2x32xf32> to vector<2x32xf32>
    %57 = vector.shape_cast %54 : vector<2x32xf32> to vector<1x2x32xf32>
    tpu.vector_store %arg5[%c1_38, %c0_39, %c0_40], %57 {strides = array<i32>} : memref<2x2x32xf32, #tpu.memory_space<vmem>>, vector<1x2x32xf32>,
    return
  }
}

</mosaic_0001>

<bundles_post_ra>
// kernel: _forward_impl.1
= control target key start
LH: loop header
LB: loop body
LE: loop exit
PB: predicated region body
PF: predicated region fallthrough
CT: control target
= control target key end

     0   :  { %v4752_v1 = vmov 0   ;;  %vm92_vm0 = vcmask 1043456   ;;  %vm88_vm1 = vcmask 326656   ;;  %v200_v54 = vlaneseq  ;;  %s5897_s0 = inlined_call_operand.vmem [shape: bf16[2,40,512], index: 0, kind: input, shape index: {}]   ;;  %s5898_s2 = inlined_call_operand.vmem [shape: f32[2,8,1], index: 2, kind: input, shape index: {}]   ;;  %s5899_s3 = inlined_call_operand.vmem [shape: bf16[2,2048,32], index: 3, kind: input, shape index: {}]   ;;  %s5900_s1 = inlined_call_operand.vmem [shape: bf16[2,8,40], index: 1, kind: input, shape index: {}]   ;;  %s5901_s4 = inlined_call_operand.vmem [shape: f32[2,1,32], index: 4, kind: input, shape index: {}]   ;;  %s5902_s5 = inlined_call_operand.vmem [shape: f32[2,2,32], index: 5, kind: output, shape index: {}]  }
   0x1   :  { %v4464_v0 = vld [vmem:[%s5897_s0 + $0x4] ss:$16 sps:$4 sm:$0xff]   ;;  %137 = vmatprep.mubr.bf16.mxu0 %v4752_v1  ;;  %178 = vmatprep.mubr.bf16.mxu1 %v4752_v1  ;;  %v4466_v2 = vld [vmem:[%s5897_s0 + $0xc] ss:$16 sps:$4 sm:$0xff]   ;;  %v4468_v3 = vld [vmem:[%s5897_s0] ss:$16 sps:$4 sm:$0xff]  }
   0x2   :  { %4463 = vset.pattern.permute.xlu0 %v4752_v1  ;;  %105 = vmatprep.subr.bf16.mxu0 %v4464_v0  ;;  %v4469_v4 = vld [vmem:[%s5897_s0 + $0x8] ss:$16 sps:$4 sm:$0xff]   ;;  %v4470_v5 = vld [vmem:[%s5897_s0 + $0x24] ss:$16 sps:$4 sm:$0xff]   ;;  %v4472_v6 = vld [vmem:[%s5897_s0 + $0x2c] ss:$16 sps:$4 sm:$0xff]  }
   0x3   :  { %146 = vmatprep.subr.bf16.mxu1 %v4466_v2  ;;  %106 = vmatpush1.bf16.msra.mxu0 %v4468_v3  ;;  %v4474_v7 = vld [vmem:[%s5897_s0 + $0x20] ss:$16 sps:$4 sm:$0xff]   ;;  %v4475_v8 = vld [vmem:[%s5897_s0 + $0x28] ss:$16 sps:$4 sm:$0xff]   ;;  %v201_v55 = vshrl.u32 %v200_v54, 7  ;;  %vm395_vm2 = vcmask 1040384  }
   0x4   :  { %147 = vmatpush1.bf16.msra.mxu1 %v4469_v4  ;;  %107 = vmatprep.subr.bf16.mxu0 %v4470_v5  ;;  %v30_v9 = vld [vmem:[%s5897_s0 + $0x40] sm:$0xff]  ;;  %v31_v10 = vld [vmem:[%s5897_s0 + $0x48] sm:$0xff]  ;;  %v4488_v28 = vld [vmem:[%s5899_s3 + $0x50] sm:$0xff]   ;;  %v4753_v56 = vmov 1935823168   ;;  %vm1780_vm3 = vcmask 254976  }
   0x5   :  { %148 = vmatprep.subr.bf16.mxu1 %v4472_v6  ;;  %v3558_v11 = vcombine.high %v30_v9, %v30_v9  ;;  %v3560_v12 = vcombine.high %v31_v10, %v31_v10  ;;  %v3557_v13 = vcombine.low %v30_v9, %v30_v9  ;;  %v3559_v14 = vcombine.low %v31_v10, %v31_v10  ;;  %v32_v15 = vld [vmem:[%s5898_s2] sm:$0xff]  ;;  %v3705_v16 = vld [vmem:[%s5898_s2 + $0x8] sm:$0xff]  ;;  %v4489_v29 = vld [vmem:[%s5899_s3 + $0xd0] sm:$0xff]  }
   0x6   :  { %35 = vperm.xlu0 %4463, %v32_v15   ;;  %v4480_v19 = vld [vmem:[%s5899_s3 + $0x40] sm:$0xff]   ;;  %v4484_v24 = vld [vmem:[%s5899_s3 + $0x48] sm:$0xff]   ;;  %v4490_v30 = vld [vmem:[%s5899_s3 + $0x10] sm:$0xff]   ;;  %v198_v57 = vunpack.c.l.s4 %v4753_v56  ;;  %v4938_v15 = vsub.s32 3, %v201_v55 }
   0x7   :  { %108 = vmatpush1.bf16.msra.mxu0 %v4474_v7  ;;  %v94_v17 = vsel %vm92_vm0, %v3557_v13, 0  ;;  %v100_v18 = vsel %vm92_vm0, %v3559_v14, 0  ;;  %v4481_v20 = vld [vmem:[%s5899_s3 + $0xc0] sm:$0xff]   ;;  %v4485_v25 = vld [vmem:[%s5899_s3 + $0xc8] sm:$0xff]   ;;  %v4491_v31 = vld [vmem:[%s5899_s3 + $0x90] sm:$0xff]   ;;  %v4936_v14 = vsub.s32 1, %v201_v55 }
   0x8   :  { %149 = vmatpush1.bf16.msra.mxu1 %v4475_v8  ;;  %3561 = vmatprep.subr.msk.bf16.mxu0 %vm92_vm0, %v3558_v11  ;;  %v21_v21 = vld [vmem:[%s5900_s1] sm:$0xf]  ;;  %v4486_v26 = vld [vmem:[%s5899_s3 + $0x8] sm:$0xff]   ;;  %v4492_v32 = vld [vmem:[%s5899_s3 + $0x58] sm:$0xff]   ;;  %v199_v61 = vunpack.c.0.s8 %v198_v57 }
   0x9   :  { %3563 = vmatprep.subr.msk.bf16.mxu1 %vm92_vm0, %v3560_v12  ;;  %v4482_v22 = vld [vmem:[%s5899_s3] sm:$0xff]   ;;  %v4487_v27 = vld [vmem:[%s5899_s3 + $0x88] sm:$0xff]   ;;  %v4493_v33 = vld [vmem:[%s5899_s3 + $0xd8] sm:$0xff]  }
   0xa   :  { %1799 = vperm.xlu0 %4463, %v3705_v16   ;;  %v4483_v23 = vld [vmem:[%s5899_s3 + $0x80] sm:$0xff]   ;;  %v4494_v34 = vld [vmem:[%s5899_s3 + $0x18] sm:$0xff]   ;;  %v4500_v40 = vld [vmem:[%s5899_s3 + $0x68] sm:$0xff]   ;;  %v4934_v12 = vsub.s32 %v199_v61, %v201_v55 }
   0xb   :  { %110 = vmatpush1.bf16.msra.mxu0 %v94_v17  ;;  %v4495_v35 = vld [vmem:[%s5899_s3 + $0x98] sm:$0xff]   ;;  %v4496_v36 = vld [vmem:[%s5899_s3 + $0x60] sm:$0xff]   ;;  %v4501_v41 = vld [vmem:[%s5899_s3 + $0xe8] sm:$0xff]  }
   0xc   :  { %151 = vmatpush1.bf16.msra.mxu1 %v100_v18  ;;  %4109 = vmatprep.subr.bf16.mxu0 %v4480_v19  ;;  %v4497_v37 = vld [vmem:[%s5899_s3 + $0xe0] sm:$0xff]   ;;  %v4502_v42 = vld [vmem:[%s5899_s3 + $0x28] sm:$0xff]   ;;  %v4504_v44 = vld [vmem:[%s5899_s3 + $0x70] sm:$0xff]  }
   0xd   :  { %4131 = vmatprep.subr.bf16.mxu1 %v4481_v20  ;;  %v4498_v38 = vld [vmem:[%s5899_s3 + $0x20] sm:$0xff]   ;;  %v4503_v43 = vld [vmem:[%s5899_s3 + $0xa8] sm:$0xff]   ;;  %v4505_v45 = vld [vmem:[%s5899_s3 + $0xf0] sm:$0xff]   ;;  %v4940_v20 = vsub.s32 0, %v201_v55 }
   0xe   :  { %3562 = vmatmul.mubr.msk.bf16.vlgmr.msra.gmra.mrb[0].mxu0 %vm88_vm1, %v21_v21  ;;  %v4499_v39 = vld [vmem:[%s5899_s3 + $0xa0] sm:$0xff]   ;;  %v4506_v46 = vld [vmem:[%s5899_s3 + $0x30] sm:$0xff]   ;;  %v4508_v48 = vld [vmem:[%s5899_s3 + $0x78] sm:$0xff]  }
   0xf   :  { %3564 = vmatmul.mubr.msk.bf16.vlgmr.msra.gmra.mrb[0].mxu1 %vm88_vm1, %v21_v21  ;;  %4110 = vmatpush3.bf16.msra.mxu0 %v4482_v22  ;;  %v4507_v47 = vld [vmem:[%s5899_s3 + $0xb0] sm:$0xff]   ;;  %v4509_v49 = vld [vmem:[%s5899_s3 + $0xf8] sm:$0xff]   ;;  %v4512_v52 = vld [vmem:[%s5899_s3 + $0x140] sm:$0xff]   ;;  %v4942_v21 = vsub.s32 2, %v201_v55  ;;  %v4944_v22 = vsub.s32 5, %v201_v55 }
  0x10   :  { %4132 = vmatpush3.bf16.msra.mxu1 %v4483_v23  ;;  %4111 = vmatprep.subr.bf16.mxu0 %v4484_v24  ;;  %v4510_v50 = vld [vmem:[%s5899_s3 + $0x38] sm:$0xff]   ;;  %v4513_v53 = vld [vmem:[%s5899_s3 + $0x1c0] sm:$0xff]   ;;  %v4518_v61 = vld [vmem:[%s5899_s3 + $0x108] sm:$0xff]  }
  0x11   :  { %4133 = vmatprep.subr.bf16.mxu1 %v4485_v25  ;;  %v4511_v51 = vld [vmem:[%s5899_s3 + $0xb8] sm:$0xff]   ;;  %v4948_v25 = vsub.s32 7, %v201_v55 }
  0x13   :  { %4112 = vmatpush3.bf16.msra.mxu0 %v4486_v26 }
  0x14   :  { %4134 = vmatpush3.bf16.msra.mxu1 %v4487_v27  ;;  %4113 = vmatprep.subr.bf16.mxu0 %v4488_v28  ;;  %v4956_v28 = vsub.s32 4, %v201_v55 }
  0x15   :  { %4135 = vmatprep.subr.bf16.mxu1 %v4489_v29  ;;  %v4958_v29 = vsub.s32 6, %v201_v55  ;;  %v4517_v55 = vld [vmem:[%s5899_s3 + $0x1c8] sm:$0xff]  }
  0x17   :  { %4114 = vmatpush3.bf16.msra.mxu0 %v4490_v30 }
  0x18   :  { %4136 = vmatpush3.bf16.msra.mxu1 %v4491_v31  ;;  %4115 = vmatprep.subr.bf16.mxu0 %v4492_v32 }
  0x19   :  { %4137 = vmatprep.subr.bf16.mxu1 %v4493_v33 }
  0x1b   :  { %4116 = vmatpush3.bf16.msra.mxu0 %v4494_v34 }
  0x1c   :  { %4138 = vmatpush3.bf16.msra.mxu1 %v4495_v35  ;;  %4117 = vmatprep.subr.bf16.mxu0 %v4496_v36 }
  0x1d   :  { %4139 = vmatprep.subr.bf16.mxu1 %v4497_v37 }
  0x1f   :  { %4118 = vmatpush3.bf16.msra.mxu0 %v4498_v38 }
  0x20   :  { %4140 = vmatpush3.bf16.msra.mxu1 %v4499_v39  ;;  %4119 = vmatprep.subr.bf16.mxu0 %v4500_v40 }
  0x21   :  { %4141 = vmatprep.subr.bf16.mxu1 %v4501_v41 }
  0x23   :  { %4120 = vmatpush3.bf16.msra.mxu0 %v4502_v42 }
  0x24   :  { %4142 = vmatpush3.bf16.msra.mxu1 %v4503_v43  ;;  %4121 = vmatprep.subr.bf16.mxu0 %v4504_v44 }
  0x25   :  { %4143 = vmatprep.subr.bf16.mxu1 %v4505_v45 }
  0x27   :  { %4122 = vmatpush3.bf16.msra.mxu0 %v4506_v46  ;;  %v4514_v46 = vld [vmem:[%s5899_s3 + $0x100] sm:$0xff]  }
  0x28   :  { %4144 = vmatpush3.bf16.msra.mxu1 %v4507_v47  ;;  %4123 = vmatprep.subr.bf16.mxu0 %v4508_v48  ;;  %v4515_v47 = vld [vmem:[%s5899_s3 + $0x180] sm:$0xff]  }
  0x29   :  { %4145 = vmatprep.subr.bf16.mxu1 %v4509_v49 }
  0x2b   :  { %4124 = vmatpush3.bf16.msra.mxu0 %v4510_v50 }
  0x2c   :  { %4146 = vmatpush3.bf16.msra.mxu1 %v4511_v51  ;;  %4153 = vmatprep.subr.bf16.mxu0 %v4512_v52  ;;  %v4516_v52 = vld [vmem:[%s5899_s3 + $0x148] sm:$0xff]  }
  0x2d   :  { %4175 = vmatprep.subr.bf16.mxu1 %v4513_v53 }
  0x85   :  { %v36_v58 = vpop.permute.xlu0 %35 }
  0xe1   :  { %v139_v59 = vpop.f32.mrb[0].mxu0 }
  0xe2   :  { %v180_v60 = vpop.f32.mrb[0].mxu1  ;;  %v140_v62 = vadd.f32 %v139_v59, %v36_v58  ;;  %v141_v0 = vpop.f32.mrb[1].mxu0 }
  0xe3   :  { %v181_v63 = vadd.f32 %v180_v60, %v36_v58  ;;  %v182_v2 = vpop.f32.mrb[1].mxu1  ;;  %v142_v3 = vadd.f32 %v141_v0, %v36_v58  ;;  %v143_v5 = vpop.f32.mrb[2].mxu0 }
  0xe4   :  { %v183_v4 = vadd.f32 %v182_v2, %v36_v58  ;;  %v184_v6 = vpop.f32.mrb[2].mxu1  ;;  %v187_v7 = vmax.f32 %v140_v62, 0.0  ;;  %v144_v9 = vpop.f32.mrb[3].mxu0  ;;  %v4519_v62 = vld [vmem:[%s5899_s3 + $0x188] sm:$0xff]  }
  0xe5   :  { %v189_v8 = vmax.f32 %v181_v63, 0.0  ;;  %v185_v10 = vpop.f32.mrb[3].mxu1  ;;  %v188_v11 = vmax.f32 %v142_v3, 0.0  ;;  %v4520_v3 = vld [vmem:[%s5899_s3 + $0x150] sm:$0xff]  }
  0xe6   :  { %v190_v13 = vmax.f32 %v183_v4, 0.0  ;;  %v4521_v4 = vld [vmem:[%s5899_s3 + $0x1d0] sm:$0xff]  }
  0xe7   :  { %v193_v16 = vcombine.low %v187_v7, %v188_v11  ;;  %v194_v17 = vcombine.high %v187_v7, %v188_v11 }
  0xe8   :  { %v213_v18 = vcombine.low %v189_v8, %v190_v13  ;;  %v214_v19 = vcombine.high %v189_v8, %v190_v13  ;;  %v4522_v13 = vld [vmem:[%s5899_s3 + $0x110] sm:$0xff]  }
  0xe9   :  { %v203_v23 = vrot.slane %v193_v16, %v4934_v12  ;;  %v4951_v26 = vrot.slane %v194_v17, %v4934_v12  ;;  %v4523_v16 = vld [vmem:[%s5899_s3 + $0x190] sm:$0xff]  }
  0xea   :  { %v223_v24 = vrot.slane %v213_v18, %v4934_v12  ;;  %v4954_v27 = vrot.slane %v214_v19, %v4934_v12 }
  0xeb   :  { %v240_v30 = vrot.slane %v203_v23, %v4936_v14  ;;  %v248_v32 = vrot.slane %v203_v23, %v4938_v15  ;;  %v236_v34 = vrot.slane %v203_v23, %v4940_v20  ;;  %v244_v36 = vrot.slane %v203_v23, %v4942_v21 }
  0xec   :  { %v322_v31 = vrot.slane %v223_v24, %v4936_v14  ;;  %v330_v33 = vrot.slane %v223_v24, %v4938_v15  ;;  %v318_v35 = vrot.slane %v223_v24, %v4940_v20  ;;  %v326_v37 = vrot.slane %v223_v24, %v4942_v21 }
  0xed   :  { %v256_v40 = vrot.slane %v203_v23, %v4944_v22  ;;  %v338_v41 = vrot.slane %v223_v24, %v4944_v22  ;;  %v264_v51 = vrot.slane %v203_v23, %v4948_v25  ;;  %v346_v54 = vrot.slane %v223_v24, %v4948_v25 }
  0xee   :  { %v397_v38 = vsel %vm395_vm2, %v240_v30, %v322_v31  ;;  %v399_v39 = vsel %vm395_vm2, %v248_v32, %v330_v33  ;;  %v396_v44 = vsel %vm395_vm2, %v236_v34, %v318_v35  ;;  %v398_v45 = vsel %vm395_vm2, %v244_v36, %v326_v37 }
  0xef   :  { %v413_v42 = vpack.c.bf16 %v397_v38, %v397_v38  ;;  %v415_v43 = vpack.c.bf16 %v399_v39, %v399_v39  ;;  %v412_v48 = vpack.c.bf16 %v396_v44, %v396_v44  ;;  %v414_v49 = vpack.c.bf16 %v398_v45, %v398_v45  ;;  %v4526_v38 = vld [vmem:[%s5899_s3 + $0x118] sm:$0xff]  }
  0xf0   :  { %v401_v50 = vsel %vm395_vm2, %v256_v40, %v338_v41  ;;  %v252_v56 = vrot.slane %v203_v23, %v4956_v28  ;;  %v334_v57 = vrot.slane %v223_v24, %v4956_v28  ;;  %v260_v58 = vrot.slane %v203_v23, %v4958_v29  ;;  %v4524_v23 = vld [vmem:[%s5899_s3 + $0x158] sm:$0xff]  }
  0xf1   :  { %1491 = vmatprep.mubr.bf16.mxu0 %v413_v42  ;;  %1531 = vmatprep.mubr.bf16.mxu1 %v415_v43  ;;  %v417_v53 = vpack.c.bf16 %v401_v50, %v401_v50  ;;  %v342_v59 = vrot.slane %v223_v24, %v4958_v29  ;;  %v403_v60 = vsel %vm395_vm2, %v264_v51, %v346_v54  ;;  %v4525_v24 = vld [vmem:[%s5899_s3 + $0x1d8] sm:$0xff]   ;;  %v4528_v42 = vld [vmem:[%s5899_s3 + $0x160] sm:$0xff]   ;;  %v4534_v50 = vld [vmem:[%s5899_s3 + $0x128] sm:$0xff]  }
  0xf2   :  { %1492 = vmatmul.mubr.bf16.vlgmr.msra.gmra.mrb[4].mxu0 %v412_v48  ;;  %1532 = vmatmul.mubr.bf16.vlgmr.msra.gmra.mrb[4].mxu1 %v414_v49  ;;  %v272_v63 = vrot.slane %v4951_v26, %v4936_v14  ;;  %v354_v0 = vrot.slane %v4954_v27, %v4936_v14  ;;  %v419_v2 = vpack.c.bf16 %v403_v60, %v403_v60  ;;  %v4527_v39 = vld [vmem:[%s5899_s3 + $0x198] sm:$0xff]   ;;  %v4529_v43 = vld [vmem:[%s5899_s3 + $0x1e0] sm:$0xff]   ;;  %v4533_v49 = vld [vmem:[%s5899_s3 + $0x1e8] sm:$0xff]  }
  0xf3   :  { %4154 = vmatpush3.bf16.msra.mxu0 %v4514_v46  ;;  %4176 = vmatpush3.bf16.msra.mxu1 %v4515_v47  ;;  %v5011_v5 = vsel %vm395_vm2, %v252_v56, %v334_v57  ;;  %v5014_v6 = vsel %vm395_vm2, %v260_v58, %v342_v59  ;;  %v280_v8 = vrot.slane %v4951_v26, %v4938_v15  ;;  %v4530_v47 = vld [vmem:[%s5899_s3 + $0x120] sm:$0xff]   ;;  %v4535_v51 = vld [vmem:[%s5899_s3 + $0x1a8] sm:$0xff]   ;;  %v4538_v54 = vld [vmem:[%s5899_s3 + $0x130] sm:$0xff]  }
  0xf4   :  { %1571 = vmatprep.mubr.bf16.mxu0 %v417_v53  ;;  %4155 = vmatprep.subr.bf16.mxu0 %v4516_v52  ;;  %v5017_v7 = vsel %vm395_vm2, %v272_v63, %v354_v0  ;;  %v362_v9 = vrot.slane %v4954_v27, %v4938_v15  ;;  %v268_v10 = vrot.slane %v4951_v26, %v4940_v20  ;;  %v4531_v48 = vld [vmem:[%s5899_s3 + $0x1a0] sm:$0xff]   ;;  %v4536_v52 = vld [vmem:[%s5899_s3 + $0x170] sm:$0xff]   ;;  %v4540_v56 = vld [vmem:[%s5899_s3 + $0x178] sm:$0xff]  }
  0xf5   :  { %4177 = vmatprep.subr.bf16.mxu1 %v4517_v55  ;;  %1611 = vmatprep.mubr.bf16.mxu1 %v419_v2  ;;  %v350_v11 = vrot.slane %v4954_v27, %v4940_v20  ;;  %v276_v17 = vrot.slane %v4951_v26, %v4942_v21  ;;  %v358_v18 = vrot.slane %v4954_v27, %v4942_v21  ;;  %v4537_v53 = vld [vmem:[%s5899_s3 + $0x1f0] sm:$0xff]   ;;  %v4541_v57 = vld [vmem:[%s5899_s3 + $0x1f8] sm:$0xff]   ;;  %v4544_v60 = vld [vmem:[%s5899_s3 + $0x240] sm:$0xff]  }
  0xf6   :  { %v288_v19 = vrot.slane %v4951_v26, %v4944_v22  ;;  %v5046_v30 = vsel %vm395_vm2, %v280_v8, %v362_v9  ;;  %v370_v32 = vrot.slane %v4954_v27, %v4944_v22  ;;  %v296_v34 = vrot.slane %v4951_v26, %v4948_v25  ;;  %v4539_v55 = vld [vmem:[%s5899_s3 + $0x1b0] sm:$0xff]   ;;  %v4542_v58 = vld [vmem:[%s5899_s3 + $0x138] sm:$0xff]   ;;  %v4547_v2 = vld [vmem:[%s5899_s3 + $0x280] sm:$0xff]  }
  0xf7   :  { %4156 = vmatpush3.bf16.msra.mxu0 %v4518_v61  ;;  %4178 = vmatpush3.bf16.msra.mxu1 %v4519_v62  ;;  %v5049_v31 = vsel %vm395_vm2, %v268_v10, %v350_v11  ;;  %v5054_v33 = vsel %vm395_vm2, %v276_v17, %v358_v18  ;;  %v378_v36 = vrot.slane %v4954_v27, %v4948_v25  ;;  %v4543_v59 = vld [vmem:[%s5899_s3 + $0x1b8] sm:$0xff]   ;;  %v4545_v61 = vld [vmem:[%s5899_s3 + $0x2c0] sm:$0xff]   ;;  %v4550_v8 = vld [vmem:[%s5899_s3 + $0x208] sm:$0xff]  }
  0xf8   :  { %4157 = vmatprep.subr.bf16.mxu0 %v4520_v3  ;;  %4179 = vmatprep.subr.bf16.mxu1 %v4521_v4  ;;  %v5059_v35 = vsel %vm395_vm2, %v288_v19, %v370_v32  ;;  %v284_v37 = vrot.slane %v4951_v26, %v4956_v28  ;;  %v366_v40 = vrot.slane %v4954_v27, %v4956_v28  ;;  %v4546_v62 = vld [vmem:[%s5899_s3 + $0x200] sm:$0xff]   ;;  %v4548_v4 = vld [vmem:[%s5899_s3 + $0x248] sm:$0xff]   ;;  %v4552_v9 = vld [vmem:[%s5899_s3 + $0x250] sm:$0xff]  }
  0xf9   :  { %v292_v41 = vrot.slane %v4951_v26, %v4958_v29  ;;  %v5082_v44 = vsel %vm395_vm2, %v296_v34, %v378_v36  ;;  %v374_v45 = vrot.slane %v4954_v27, %v4958_v29  ;;  %v4532_v27 = vld [vmem:[%s5899_s3 + $0x168] sm:$0xff]   ;;  %v416_v63 = vpack.c.bf16 %v5011_v5, %v5011_v5  ;;  %v4553_v10 = vld [vmem:[%s5899_s3 + $0x2d0] sm:$0xff]   ;;  %v4557_v17 = vld [vmem:[%s5899_s3 + $0x2d8] sm:$0xff]  }
  0xfa   :  { %v5087_v46 = vsel %vm395_vm2, %v284_v37, %v366_v40  ;;  %v418_v0 = vpack.c.bf16 %v5014_v6, %v5014_v6  ;;  %v421_v3 = vpack.c.bf16 %v5017_v7, %v5017_v7  ;;  %v4549_v5 = vld [vmem:[%s5899_s3 + $0x2c8] sm:$0xff]   ;;  %v423_v6 = vpack.c.bf16 %v5046_v30, %v5046_v30  ;;  %v4554_v11 = vld [vmem:[%s5899_s3 + $0x210] sm:$0xff]   ;;  %v4558_v18 = vld [vmem:[%s5899_s3 + $0x218] sm:$0xff]  }
  0xfb   :  { %4158 = vmatpush3.bf16.msra.mxu0 %v4522_v13  ;;  %4180 = vmatpush3.bf16.msra.mxu1 %v4523_v16  ;;  %v5090_v26 = vsel %vm395_vm2, %v292_v41, %v374_v45  ;;  %v4551_v7 = vld [vmem:[%s5899_s3 + $0x288] sm:$0xff]   ;;  %v4555_v13 = vld [vmem:[%s5899_s3 + $0x290] sm:$0xff]   ;;  %v4556_v16 = vld [vmem:[%s5899_s3 + $0x258] sm:$0xff]  }
  0xfc   :  { %4159 = vmatprep.subr.bf16.mxu0 %v4524_v23  ;;  %4181 = vmatprep.subr.bf16.mxu1 %v4525_v24  ;;  %v4559_v19 = vld [vmem:[%s5899_s3 + $0x298] sm:$0xff]   ;;  %v4560_v23 = vld [vmem:[%s5899_s3 + $0x260] sm:$0xff]   ;;  %v4564_v34 = vld [vmem:[%s5899_s3 + $0x268] sm:$0xff]  }
  0xfd   :  { %v4561_v24 = vld [vmem:[%s5899_s3 + $0x2e0] sm:$0xff]   ;;  %v4565_v36 = vld [vmem:[%s5899_s3 + $0x2e8] sm:$0xff]   ;;  %v4569_v40 = vld [vmem:[%s5899_s3 + $0x2f0] sm:$0xff]  }
  0xfe   :  { %v4562_v30 = vld [vmem:[%s5899_s3 + $0x220] sm:$0xff]   ;;  %v4566_v37 = vld [vmem:[%s5899_s3 + $0x228] sm:$0xff]   ;;  %v4570_v41 = vld [vmem:[%s5899_s3 + $0x230] sm:$0xff]  }
  0xff   :  { %4160 = vmatpush3.bf16.msra.mxu0 %v4526_v38  ;;  %4182 = vmatpush3.bf16.msra.mxu1 %v4527_v39  ;;  %v4563_v32 = vld [vmem:[%s5899_s3 + $0x2a0] sm:$0xff]   ;;  %v4567_v38 = vld [vmem:[%s5899_s3 + $0x2a8] sm:$0xff]   ;;  %v4568_v39 = vld [vmem:[%s5899_s3 + $0x270] sm:$0xff]  }
 0x100   :  { %4161 = vmatprep.subr.bf16.mxu0 %v4528_v42  ;;  %4183 = vmatprep.subr.bf16.mxu1 %v4529_v43  ;;  %v4571_v42 = vld [vmem:[%s5899_s3 + $0x2b0] sm:$0xff]   ;;  %v4572_v43 = vld [vmem:[%s5899_s3 + $0x278] sm:$0xff]  }
 0x101   :  { %v4573_v45 = vld [vmem:[%s5899_s3 + $0x2f8] sm:$0xff]  }
 0x103   :  { %4162 = vmatpush3.bf16.msra.mxu0 %v4530_v47  ;;  %4184 = vmatpush3.bf16.msra.mxu1 %v4531_v48  ;;  %v4574_v47 = vld [vmem:[%s5899_s3 + $0x238] sm:$0xff]  }
 0x104   :  { %4163 = vmatprep.subr.bf16.mxu0 %v4532_v27  ;;  %4185 = vmatprep.subr.bf16.mxu1 %v4533_v49  ;;  %v4575_v48 = vld [vmem:[%s5899_s3 + $0x2b8] sm:$0xff]   ;;  %v4576_v27 = vld [vmem:[%s5899_s3 + $0x340] sm:$0xff]  }
 0x105   :  { %v4577_v49 = vld [vmem:[%s5899_s3 + $0x3c0] sm:$0xff]  }
 0x107   :  { %4164 = vmatpush3.bf16.msra.mxu0 %v4534_v50  ;;  %4186 = vmatpush3.bf16.msra.mxu1 %v4535_v51  ;;  %v4578_v50 = vld [vmem:[%s5899_s3 + $0x300] sm:$0xff]   ;;  %v420_v51 = vpack.c.bf16 %v5049_v31, %v5049_v31  ;;  %v4581_v31 = vld [vmem:[%s5899_s3 + $0x3c8] sm:$0xff]  }
 0x108   :  { %4165 = vmatprep.subr.bf16.mxu0 %v4536_v52  ;;  %4187 = vmatprep.subr.bf16.mxu1 %v4537_v53  ;;  %v4579_v52 = vld [vmem:[%s5899_s3 + $0x380] sm:$0xff]   ;;  %v422_v53 = vpack.c.bf16 %v5054_v33, %v5054_v33  ;;  %v4582_v33 = vld [vmem:[%s5899_s3 + $0x308] sm:$0xff]  }
 0x10b   :  { %4166 = vmatpush3.bf16.msra.mxu0 %v4538_v54  ;;  %4188 = vmatpush3.bf16.msra.mxu1 %v4539_v55  ;;  %v4580_v54 = vld [vmem:[%s5899_s3 + $0x348] sm:$0xff]   ;;  %v425_v55 = vpack.c.bf16 %v5059_v35, %v5059_v35  ;;  %v4584_v35 = vld [vmem:[%s5899_s3 + $0x350] sm:$0xff]  }
 0x10c   :  { %4167 = vmatprep.subr.bf16.mxu0 %v4540_v56  ;;  %4189 = vmatprep.subr.bf16.mxu1 %v4541_v57  ;;  %v427_v56 = vpack.c.bf16 %v5082_v44, %v5082_v44  ;;  %v4583_v57 = vld [vmem:[%s5899_s3 + $0x388] sm:$0xff]   ;;  %v4585_v44 = vld [vmem:[%s5899_s3 + $0x3d0] sm:$0xff]  }
 0x10f   :  { %4168 = vmatpush3.bf16.msra.mxu0 %v4542_v58  ;;  %4190 = vmatpush3.bf16.msra.mxu1 %v4543_v59  ;;  %v4586_v58 = vld [vmem:[%s5899_s3 + $0x310] sm:$0xff]  }
 0x110   :  { %4197 = vmatprep.subr.bf16.mxu0 %v4544_v60  ;;  %4219 = vmatprep.subr.bf16.mxu1 %v4545_v61  ;;  %v4587_v59 = vld [vmem:[%s5899_s3 + $0x390] sm:$0xff]   ;;  %v4588_v60 = vld [vmem:[%s5899_s3 + $0x358] sm:$0xff]  }
 0x111   :  { %v4589_v61 = vld [vmem:[%s5899_s3 + $0x3d8] sm:$0xff]  }
 0x112   :  { %1572 = vmatmul.mubr.bf16.vlgmr.msra.gmra.mrb[8].mxu0 %v416_v63  ;;  %1612 = vmatmul.mubr.bf16.vlgmr.msra.gmra.mrb[8].mxu1 %v418_v0  ;;  %v4591_v63 = vld [vmem:[%s5899_s3 + $0x398] sm:$0xff]   ;;  %v4592_v0 = vld [vmem:[%s5899_s3 + $0x360] sm:$0xff]  }
 0x113   :  { %4198 = vmatpush3.bf16.msra.mxu0 %v4546_v62  ;;  %1651 = vmatprep.mubr.bf16.mxu0 %v421_v3  ;;  %v4590_v62 = vld [vmem:[%s5899_s3 + $0x318] sm:$0xff]   ;;  %v4594_v3 = vld [vmem:[%s5899_s3 + $0x320] sm:$0xff]  }
 0x114   :  { %4220 = vmatpush3.bf16.msra.mxu1 %v4547_v2  ;;  %1691 = vmatprep.mubr.bf16.mxu1 %v423_v6  ;;  %v4593_v2 = vld [vmem:[%s5899_s3 + $0x3e0] sm:$0xff]   ;;  %v4597_v6 = vld [vmem:[%s5899_s3 + $0x3e8] sm:$0xff]  }
 0x115   :  { %4199 = vmatprep.subr.bf16.mxu0 %v4548_v4  ;;  %4221 = vmatprep.subr.bf16.mxu1 %v4549_v5  ;;  %v4595_v4 = vld [vmem:[%s5899_s3 + $0x3a0] sm:$0xff]   ;;  %v4596_v5 = vld [vmem:[%s5899_s3 + $0x368] sm:$0xff]  }
 0x117   :  { %4200 = vmatpush3.bf16.msra.mxu0 %v4550_v8  ;;  %v4598_v8 = vld [vmem:[%s5899_s3 + $0x328] sm:$0xff]  }
 0x118   :  { %4222 = vmatpush3.bf16.msra.mxu1 %v4551_v7  ;;  %4201 = vmatprep.subr.bf16.mxu0 %v4552_v9  ;;  %v4599_v7 = vld [vmem:[%s5899_s3 + $0x3a8] sm:$0xff]   ;;  %v4600_v9 = vld [vmem:[%s5899_s3 + $0x370] sm:$0xff]  }
 0x119   :  { %4223 = vmatprep.subr.bf16.mxu1 %v4553_v10  ;;  %v4601_v10 = vld [vmem:[%s5899_s3 + $0x3f0] sm:$0xff]  }
 0x11b   :  { %4202 = vmatpush3.bf16.msra.mxu0 %v4554_v11  ;;  %v4602_v11 = vld [vmem:[%s5899_s3 + $0x330] sm:$0xff]  }
 0x11c   :  { %4224 = vmatpush3.bf16.msra.mxu1 %v4555_v13  ;;  %4203 = vmatprep.subr.bf16.mxu0 %v4556_v16  ;;  %v4603_v13 = vld [vmem:[%s5899_s3 + $0x3b0] sm:$0xff]   ;;  %v4604_v16 = vld [vmem:[%s5899_s3 + $0x378] sm:$0xff]  }
 0x11d   :  { %4225 = vmatprep.subr.bf16.mxu1 %v4557_v17  ;;  %v4605_v17 = vld [vmem:[%s5899_s3 + $0x3f8] sm:$0xff]  }
 0x11f   :  { %4204 = vmatpush3.bf16.msra.mxu0 %v4558_v18  ;;  %v4606_v18 = vld [vmem:[%s5899_s3 + $0x338] sm:$0xff]  }
 0x120   :  { %4226 = vmatpush3.bf16.msra.mxu1 %v4559_v19  ;;  %4205 = vmatprep.subr.bf16.mxu0 %v4560_v23  ;;  %v4607_v19 = vld [vmem:[%s5899_s3 + $0x3b8] sm:$0xff]   ;;  %v4610_v23 = vld [vmem:[%s5897_s0 + $0x54] ss:$16 sps:$4 sm:$0xff]  }
 0x121   :  { %4227 = vmatprep.subr.bf16.mxu1 %v4561_v24  ;;  %v4613_v24 = vld [vmem:[%s5897_s0 + $0x5c] ss:$16 sps:$4 sm:$0xff]  }
 0x123   :  { %4206 = vmatpush3.bf16.msra.mxu0 %v4562_v30  ;;  %v4608_v30 = vld [vmem:[%s5897_s0 + $0x50] ss:$16 sps:$4 sm:$0xff]  }
 0x124   :  { %4228 = vmatpush3.bf16.msra.mxu1 %v4563_v32  ;;  %4207 = vmatprep.subr.bf16.mxu0 %v4564_v34  ;;  %v424_v32 = vpack.c.bf16 %v5087_v46, %v5087_v46  ;;  %v4611_v34 = vld [vmem:[%s5897_s0 + $0x58] ss:$16 sps:$4 sm:$0xff]   ;;  %v3703_v46 = vld [vmem:[%s5897_s0 + $0x90] sm:$0xff] }
 0x125   :  { %4229 = vmatprep.subr.bf16.mxu1 %v4565_v36  ;;  %v4616_v36 = vld [vmem:[%s5897_s0 + $0x74] ss:$16 sps:$4 sm:$0xff]  }
 0x127   :  { %4208 = vmatpush3.bf16.msra.mxu0 %v4566_v37  ;;  %v426_v37 = vpack.c.bf16 %v5090_v26, %v5090_v26  ;;  %v4614_v26 = vld [vmem:[%s5897_s0 + $0x70] ss:$16 sps:$4 sm:$0xff]  }
 0x128   :  { %4230 = vmatpush3.bf16.msra.mxu1 %v4567_v38  ;;  %4209 = vmatprep.subr.bf16.mxu0 %v4568_v39  ;;  %v4619_v38 = vld [vmem:[%s5897_s0 + $0x7c] ss:$16 sps:$4 sm:$0xff]  }
 0x129   :  { %4231 = vmatprep.subr.bf16.mxu1 %v4569_v40  ;;  %v3704_v39 = vld [vmem:[%s5897_s0 + $0x98] sm:$0xff] }
 0x12a   :  { %v4617_v40 = vld [vmem:[%s5897_s0 + $0x78] ss:$16 sps:$4 sm:$0xff]  }
 0x12b   :  { %4210 = vmatpush3.bf16.msra.mxu0 %v4570_v41  ;;  %v3715_v41 = vcombine.high %v3703_v46, %v3703_v46 }
 0x12c   :  { %4232 = vmatpush3.bf16.msra.mxu1 %v4571_v42  ;;  %4211 = vmatprep.subr.bf16.mxu0 %v4572_v43  ;;  %v3714_v42 = vcombine.low %v3703_v46, %v3703_v46  ;;  %v3717_v43 = vcombine.high %v3704_v39, %v3704_v39 }
 0x12d   :  { %4233 = vmatprep.subr.bf16.mxu1 %v4573_v45  ;;  %v3716_v45 = vcombine.low %v3704_v39, %v3704_v39 }
 0x12f   :  { %4212 = vmatpush3.bf16.msra.mxu0 %v4574_v47  ;;  %v1856_v47 = vsel %vm92_vm0, %v3714_v42, 0 }
 0x130   :  { %4234 = vmatpush3.bf16.msra.mxu1 %v4575_v48  ;;  %4241 = vmatprep.subr.bf16.mxu0 %v4576_v27  ;;  %v1862_v48 = vsel %vm92_vm0, %v3716_v45, 0  ;;  %v3694_v27 = vld [vmem:[%s5900_s1 + $0x4] sm:$0xf] }
 0x131   :  { %4263 = vmatprep.subr.bf16.mxu1 %v4577_v49  ;;  %v4625_v49 = vld [vmem:[%s5899_s3 + $0x4c0] sm:$0xff]  }
 0x132   :  { %1652 = vmatmul.mubr.bf16.vlgmr.msra.gmra.mrb[12].mxu0 %v420_v51  ;;  %v4627_v51 = vld [vmem:[%s5899_s3 + $0x480] sm:$0xff]  }
 0x133   :  { %1692 = vmatmul.mubr.bf16.vlgmr.msra.gmra.mrb[12].mxu1 %v422_v53  ;;  %4242 = vmatpush3.bf16.msra.mxu0 %v4578_v50  ;;  %v4626_v50 = vld [vmem:[%s5899_s3 + $0x400] sm:$0xff]   ;;  %v4629_v53 = vld [vmem:[%s5899_s3 + $0x4c8] sm:$0xff]  }
 0x134   :  { %1731 = vmatprep.mubr.bf16.mxu0 %v425_v55  ;;  %4264 = vmatpush3.bf16.msra.mxu1 %v4579_v52  ;;  %v4628_v52 = vld [vmem:[%s5899_s3 + $0x448] sm:$0xff]  }
 0x135   :  { %1771 = vmatprep.mubr.bf16.mxu1 %v427_v56  ;;  %4243 = vmatprep.subr.bf16.mxu0 %v4580_v54  ;;  %v4630_v54 = vld [vmem:[%s5899_s3 + $0x408] sm:$0xff]   ;;  %v4633_v56 = vld [vmem:[%s5899_s3 + $0x4d0] sm:$0xff]  }
 0x136   :  { %4265 = vmatprep.subr.bf16.mxu1 %v4581_v31  ;;  %v4631_v55 = vld [vmem:[%s5899_s3 + $0x488] sm:$0xff]   ;;  %v4632_v31 = vld [vmem:[%s5899_s3 + $0x450] sm:$0xff]  }
 0x137   :  { %4244 = vmatpush3.bf16.msra.mxu0 %v4582_v33  ;;  %v4634_v33 = vld [vmem:[%s5899_s3 + $0x410] sm:$0xff]  }
 0x138   :  { %4266 = vmatpush3.bf16.msra.mxu1 %v4583_v57  ;;  %4245 = vmatprep.subr.bf16.mxu0 %v4584_v35  ;;  %v4635_v57 = vld [vmem:[%s5899_s3 + $0x490] sm:$0xff]   ;;  %v4636_v35 = vld [vmem:[%s5899_s3 + $0x458] sm:$0xff]  }
 0x139   :  { %4267 = vmatprep.subr.bf16.mxu1 %v4585_v44  ;;  %v4637_v44 = vld [vmem:[%s5899_s3 + $0x4d8] sm:$0xff]  }
 0x13b   :  { %4246 = vmatpush3.bf16.msra.mxu0 %v4586_v58  ;;  %v4638_v58 = vld [vmem:[%s5899_s3 + $0x418] sm:$0xff]  }
 0x13c   :  { %4268 = vmatpush3.bf16.msra.mxu1 %v4587_v59  ;;  %4247 = vmatprep.subr.bf16.mxu0 %v4588_v60  ;;  %v4639_v59 = vld [vmem:[%s5899_s3 + $0x498] sm:$0xff]   ;;  %v4640_v60 = vld [vmem:[%s5899_s3 + $0x460] sm:$0xff]  }
 0x13d   :  { %4269 = vmatprep.subr.bf16.mxu1 %v4589_v61  ;;  %v4641_v61 = vld [vmem:[%s5899_s3 + $0x4e0] sm:$0xff]  }
 0x13f   :  { %4248 = vmatpush3.bf16.msra.mxu0 %v4590_v62  ;;  %v4642_v62 = vld [vmem:[%s5899_s3 + $0x420] sm:$0xff]  }
 0x140   :  { %4270 = vmatpush3.bf16.msra.mxu1 %v4591_v63  ;;  %4249 = vmatprep.subr.bf16.mxu0 %v4592_v0  ;;  %v4643_v63 = vld [vmem:[%s5899_s3 + $0x4a0] sm:$0xff]   ;;  %v4644_v0 = vld [vmem:[%s5899_s3 + $0x468] sm:$0xff]  }
 0x141   :  { %4271 = vmatprep.subr.bf16.mxu1 %v4593_v2  ;;  %v4645_v2 = vld [vmem:[%s5899_s3 + $0x4e8] sm:$0xff]  }
 0x143   :  { %4250 = vmatpush3.bf16.msra.mxu0 %v4594_v3  ;;  %v4646_v3 = vld [vmem:[%s5899_s3 + $0x428] sm:$0xff]  }
 0x144   :  { %4272 = vmatpush3.bf16.msra.mxu1 %v4595_v4  ;;  %4251 = vmatprep.subr.bf16.mxu0 %v4596_v5  ;;  %v4647_v4 = vld [vmem:[%s5899_s3 + $0x4a8] sm:$0xff]   ;;  %v4648_v5 = vld [vmem:[%s5899_s3 + $0x470] sm:$0xff]  }
 0x145   :  { %4273 = vmatprep.subr.bf16.mxu1 %v4597_v6  ;;  %v4649_v6 = vld [vmem:[%s5899_s3 + $0x4f0] sm:$0xff]  }
 0x147   :  { %4252 = vmatpush3.bf16.msra.mxu0 %v4598_v8  ;;  %v4650_v8 = vld [vmem:[%s5899_s3 + $0x430] sm:$0xff]  }
 0x148   :  { %4274 = vmatpush3.bf16.msra.mxu1 %v4599_v7  ;;  %4253 = vmatprep.subr.bf16.mxu0 %v4600_v9  ;;  %v4651_v7 = vld [vmem:[%s5899_s3 + $0x4b0] sm:$0xff]   ;;  %v4652_v9 = vld [vmem:[%s5899_s3 + $0x478] sm:$0xff]  }
 0x149   :  { %4275 = vmatprep.subr.bf16.mxu1 %v4601_v10  ;;  %v4653_v10 = vld [vmem:[%s5899_s3 + $0x4f8] sm:$0xff]  }
 0x14b   :  { %4254 = vmatpush3.bf16.msra.mxu0 %v4602_v11  ;;  %v4654_v11 = vld [vmem:[%s5899_s3 + $0x438] sm:$0xff]  }
 0x14c   :  { %4276 = vmatpush3.bf16.msra.mxu1 %v4603_v13  ;;  %4255 = vmatprep.subr.bf16.mxu0 %v4604_v16  ;;  %v4655_v13 = vld [vmem:[%s5899_s3 + $0x4b8] sm:$0xff]   ;;  %v4656_v16 = vld [vmem:[%s5899_s3 + $0x540] sm:$0xff]  }
 0x14d   :  { %4277 = vmatprep.subr.bf16.mxu1 %v4605_v17  ;;  %v4657_v17 = vld [vmem:[%s5899_s3 + $0x5c0] sm:$0xff]  }
 0x14f   :  { %4256 = vmatpush3.bf16.msra.mxu0 %v4606_v18 }
 0x150   :  { %4278 = vmatpush3.bf16.msra.mxu1 %v4607_v19  ;;  %1867 = vmatprep.subr.bf16.mxu0 %v4610_v23  ;;  %v3565_v23 = vld [vmem:[%s5901_s4] ss:$0 sm:$0xff] }
 0x151   :  { %1908 = vmatprep.subr.bf16.mxu1 %v4613_v24 }
 0x152   :  { %1732 = vmatmul.mubr.bf16.vlgmr.msra.gmra.mrb[16].mxu0 %v424_v32 }
 0x153   :  { %1772 = vmatmul.mubr.bf16.vlgmr.msra.gmra.mrb[16].mxu1 %v426_v37  ;;  %1868 = vmatpush1.bf16.msra.mxu0 %v4608_v30 }
 0x154   :  { %1909 = vmatpush1.bf16.msra.mxu1 %v4611_v34  ;;  %1869 = vmatprep.subr.bf16.mxu0 %v4616_v36 }
 0x155   :  { %1910 = vmatprep.subr.bf16.mxu1 %v4619_v38  ;;  %1899 = vmatprep.mubr.bf16.mxu0 %v4752_v1 }
 0x156   :  { %1940 = vmatprep.mubr.bf16.mxu1 %v4752_v1  ;;  %v4624_v1 = vld [vmem:[%s5899_s3 + $0x440] sm:$0xff]  }
 0x157   :  { %1870 = vmatpush1.bf16.msra.mxu0 %v4614_v26 }
 0x158   :  { %1911 = vmatpush1.bf16.msra.mxu1 %v4617_v40  ;;  %3718 = vmatprep.subr.msk.bf16.mxu0 %vm92_vm0, %v3715_v41 }
 0x159   :  { %3720 = vmatprep.subr.msk.bf16.mxu1 %vm92_vm0, %v3717_v43 }
 0x15b   :  { %1872 = vmatpush1.bf16.msra.mxu0 %v1856_v47 }
 0x15c   :  { %1913 = vmatpush1.bf16.msra.mxu1 %v1862_v48  ;;  %4285 = vmatprep.subr.bf16.mxu0 %v4624_v1 }
 0x15d   :  { %4307 = vmatprep.subr.bf16.mxu1 %v4625_v49 }
 0x15e   :  { %3719 = vmatmul.mubr.msk.bf16.vlgmr.msra.gmra.mrb[20].mxu0 %vm88_vm1, %v3694_v27 }
 0x15f   :  { %3721 = vmatmul.mubr.msk.bf16.vlgmr.msra.gmra.mrb[20].mxu1 %vm88_vm1, %v3694_v27  ;;  %4286 = vmatpush3.bf16.msra.mxu0 %v4626_v50 }
 0x160   :  { %4308 = vmatpush3.bf16.msra.mxu1 %v4627_v51  ;;  %4287 = vmatprep.subr.bf16.mxu0 %v4628_v52 }
 0x161   :  { %4309 = vmatprep.subr.bf16.mxu1 %v4629_v53 }
 0x163   :  { %4288 = vmatpush3.bf16.msra.mxu0 %v4630_v54 }
 0x164   :  { %4310 = vmatpush3.bf16.msra.mxu1 %v4631_v55  ;;  %4289 = vmatprep.subr.bf16.mxu0 %v4632_v31 }
 0x165   :  { %4311 = vmatprep.subr.bf16.mxu1 %v4633_v56 }
 0x167   :  { %4290 = vmatpush3.bf16.msra.mxu0 %v4634_v33 }
 0x168   :  { %4312 = vmatpush3.bf16.msra.mxu1 %v4635_v57  ;;  %4291 = vmatprep.subr.bf16.mxu0 %v4636_v35 }
 0x169   :  { %4313 = vmatprep.subr.bf16.mxu1 %v4637_v44 }
 0x16b   :  { %4292 = vmatpush3.bf16.msra.mxu0 %v4638_v58 }
 0x16c   :  { %4314 = vmatpush3.bf16.msra.mxu1 %v4639_v59  ;;  %4293 = vmatprep.subr.bf16.mxu0 %v4640_v60 }
 0x16d   :  { %4315 = vmatprep.subr.bf16.mxu1 %v4641_v61 }
 0x16f   :  { %4294 = vmatpush3.bf16.msra.mxu0 %v4642_v62 }
 0x170   :  { %4316 = vmatpush3.bf16.msra.mxu1 %v4643_v63  ;;  %4295 = vmatprep.subr.bf16.mxu0 %v4644_v0 }
 0x171   :  { %4317 = vmatprep.subr.bf16.mxu1 %v4645_v2 }
 0x173   :  { %4296 = vmatpush3.bf16.msra.mxu0 %v4646_v3 }
 0x174   :  { %4318 = vmatpush3.bf16.msra.mxu1 %v4647_v4  ;;  %4297 = vmatprep.subr.bf16.mxu0 %v4648_v5 }
 0x175   :  { %4319 = vmatprep.subr.bf16.mxu1 %v4649_v6 }
 0x177   :  { %4298 = vmatpush3.bf16.msra.mxu0 %v4650_v8 }
 0x178   :  { %4320 = vmatpush3.bf16.msra.mxu1 %v4651_v7  ;;  %4299 = vmatprep.subr.bf16.mxu0 %v4652_v9 }
 0x179   :  { %4321 = vmatprep.subr.bf16.mxu1 %v4653_v10  ;;  %v1800_v10 = vpop.permute.xlu0 %1799 }
 0x17b   :  { %4300 = vmatpush3.bf16.msra.mxu0 %v4654_v11 }
 0x17c   :  { %4322 = vmatpush3.bf16.msra.mxu1 %v4655_v13  ;;  %4329 = vmatprep.subr.bf16.mxu0 %v4656_v16 }
 0x17d   :  { %4351 = vmatprep.subr.bf16.mxu1 %v4657_v17 }
 0x1c5   :  { %v4125_v18 = vpop.f32.mrb[4].mxu0  ;;  %v4147_v19 = vpop.f32.mrb[4].mxu1 }
 0x1c6   :  { %v4126_v24 = vpop.f32.mrb[5].mxu0  ;;  %v4148_v30 = vpop.f32.mrb[5].mxu1 }
 0x1c7   :  { %v4127_v32 = vadd.f32 %v4126_v24, %v4125_v18  ;;  %v4149_v34 = vadd.f32 %v4148_v30, %v4147_v19  ;;  %v4128_v36 = vpop.f32.mrb[6].mxu0  ;;  %v4150_v37 = vpop.f32.mrb[6].mxu1 }
 0x1c8   :  { %v4129_v38 = vpop.f32.mrb[7].mxu0  ;;  %v4151_v46 = vpop.f32.mrb[7].mxu1 }
 0x1c9   :  { %v1494_v39 = vadd.f32 %v4127_v32, %v3565_v23 }
 0x1cb   :  { %v1534_v26 = vadd.f32 %v4149_v34, %v1494_v39 }
 0x1e5   :  { %v4169_v40 = vpop.f32.mrb[8].mxu0  ;;  %v4191_v41 = vpop.f32.mrb[8].mxu1 }
 0x1e6   :  { %v4170_v42 = vpop.f32.mrb[9].mxu0  ;;  %v4192_v43 = vpop.f32.mrb[9].mxu1 }
 0x1e7   :  { %v4171_v45 = vadd.f32 %v4170_v42, %v4169_v40  ;;  %v4193_v47 = vadd.f32 %v4192_v43, %v4191_v41  ;;  %v4172_v48 = vpop.f32.mrb[10].mxu0  ;;  %v4194_v27 = vpop.f32.mrb[10].mxu1 }
 0x1e8   :  { %v4173_v1 = vpop.f32.mrb[11].mxu0  ;;  %v4195_v49 = vpop.f32.mrb[11].mxu1 }
 0x1e9   :  { %v1574_v50 = vadd.f32 %v4171_v45, %v1534_v26 }
 0x1eb   :  { %v1614_v51 = vadd.f32 %v4193_v47, %v1574_v50 }
 0x205   :  { %v4213_v52 = vpop.f32.mrb[12].mxu0 }
 0x206   :  { %v4235_v53 = vpop.f32.mrb[12].mxu1  ;;  %v4214_v54 = vpop.f32.mrb[13].mxu0 }
 0x207   :  { %v4215_v55 = vadd.f32 %v4214_v54, %v4213_v52  ;;  %v4236_v31 = vpop.f32.mrb[13].mxu1  ;;  %v4216_v56 = vpop.f32.mrb[14].mxu0 }
 0x208   :  { %v4237_v33 = vadd.f32 %v4236_v31, %v4235_v53  ;;  %v4238_v57 = vpop.f32.mrb[14].mxu1  ;;  %v4217_v35 = vpop.f32.mrb[15].mxu0 }
 0x209   :  { %v1654_v44 = vadd.f32 %v4215_v55, %v1614_v51  ;;  %v4239_v58 = vpop.f32.mrb[15].mxu1 }
 0x20b   :  { %v1694_v59 = vadd.f32 %v4237_v33, %v1654_v44 }
 0x225   :  { %v4257_v60 = vpop.f32.mrb[16].mxu0 }
 0x226   :  { %v4279_v61 = vpop.f32.mrb[16].mxu1  ;;  %v4258_v62 = vpop.f32.mrb[17].mxu0 }
 0x227   :  { %v4259_v63 = vadd.f32 %v4258_v62, %v4257_v60  ;;  %v4280_v0 = vpop.f32.mrb[17].mxu1  ;;  %v4260_v2 = vpop.f32.mrb[18].mxu0  ;;  %v4658_v62 = vld [vmem:[%s5899_s3 + $0x500] sm:$0xff]  }
 0x228   :  { %v4281_v3 = vadd.f32 %v4280_v0, %v4279_v61  ;;  %v4282_v4 = vpop.f32.mrb[18].mxu1  ;;  %v4261_v5 = vpop.f32.mrb[19].mxu0 }
 0x229   :  { %v1734_v6 = vadd.f32 %v4259_v63, %v1694_v59  ;;  %v4283_v8 = vpop.f32.mrb[19].mxu1  ;;  %v4659_v63 = vld [vmem:[%s5899_s3 + $0x580] sm:$0xff]  }
 0x22a   :  { %v4660_v8 = vld [vmem:[%s5899_s3 + $0x548] sm:$0xff]  }
 0x22b   :  { %v1774_v7 = vadd.f32 %v4281_v3, %v1734_v6 }
 0x22d   :  { %v1779_v9 = vmax.f32 %v1774_v7, 0.0  ;;  %v4661_v7 = vld [vmem:[%s5899_s3 + $0x5c8] sm:$0xff]  }
 0x22f   :  { %1781 = vst.msk [vmem:[%s5902_s5] sm:$0x3] %vm1780_vm3, %v1779_v9 }
 0x231   :  { %v1901_v11 = vpop.f32.mrb[20].mxu0 }
 0x232   :  { %v1902_v13 = vadd.f32 %v1901_v11, %v1800_v10  ;;  %v1942_v16 = vpop.f32.mrb[20].mxu1  ;;  %v1903_v17 = vpop.f32.mrb[21].mxu0 }
 0x233   :  { %v1943_v18 = vadd.f32 %v1942_v16, %v1800_v10  ;;  %v1904_v19 = vadd.f32 %v1903_v17, %v1800_v10  ;;  %v1944_v23 = vpop.f32.mrb[21].mxu1  ;;  %v1905_v24 = vpop.f32.mrb[22].mxu0  ;;  %v4662_v16 = vld [vmem:[%s5899_s3 + $0x508] sm:$0xff]  }
 0x234   :  { %v1949_v30 = vmax.f32 %v1902_v13, 0.0  ;;  %v1945_v32 = vadd.f32 %v1944_v23, %v1800_v10  ;;  %v1946_v34 = vpop.f32.mrb[22].mxu1  ;;  %v1906_v36 = vpop.f32.mrb[23].mxu0  ;;  %v4663_v17 = vld [vmem:[%s5899_s3 + $0x588] sm:$0xff]   ;;  %v4664_v23 = vld [vmem:[%s5899_s3 + $0x550] sm:$0xff]  }
 0x235   :  { %v1951_v37 = vmax.f32 %v1943_v18, 0.0  ;;  %v1950_v38 = vmax.f32 %v1904_v19, 0.0  ;;  %v1947_v46 = vpop.f32.mrb[23].mxu1  ;;  %v4665_v24 = vld [vmem:[%s5899_s3 + $0x5d0] sm:$0xff]  }
 0x236   :  { %v1952_v39 = vmax.f32 %v1945_v32, 0.0  ;;  %v4666_v46 = vld [vmem:[%s5899_s3 + $0x510] sm:$0xff]  }
 0x237   :  { %v1955_v26 = vcombine.low %v1949_v30, %v1950_v38  ;;  %v1956_v40 = vcombine.high %v1949_v30, %v1950_v38 }
 0x238   :  { %v1975_v41 = vcombine.low %v1951_v37, %v1952_v39  ;;  %v1976_v42 = vcombine.high %v1951_v37, %v1952_v39  ;;  %v4667_v39 = vld [vmem:[%s5899_s3 + $0x590] sm:$0xff]  }
 0x239   :  { %v1965_v43 = vrot.slane %v1955_v26, %v4934_v12  ;;  %v5498_v45 = vrot.slane %v1956_v40, %v4934_v12  ;;  %v4669_v40 = vld [vmem:[%s5899_s3 + $0x5d8] sm:$0xff]  }
 0x23a   :  { %v1985_v47 = vrot.slane %v1975_v41, %v4934_v12  ;;  %v5502_v48 = vrot.slane %v1976_v42, %v4934_v12 }
 0x23b   :  { %v2002_v27 = vrot.slane %v1965_v43, %v4936_v14  ;;  %v2010_v1 = vrot.slane %v1965_v43, %v4938_v15  ;;  %v1998_v49 = vrot.slane %v1965_v43, %v4940_v20  ;;  %v2006_v50 = vrot.slane %v1965_v43, %v4942_v21 }
 0x23c   :  { %v2084_v51 = vrot.slane %v1985_v47, %v4936_v14  ;;  %v2092_v52 = vrot.slane %v1985_v47, %v4938_v15  ;;  %v2080_v53 = vrot.slane %v1985_v47, %v4940_v20  ;;  %v2088_v54 = vrot.slane %v1985_v47, %v4942_v21 }
 0x23d   :  { %v2018_v55 = vrot.slane %v1965_v43, %v4944_v22  ;;  %v2100_v12 = vrot.slane %v1985_v47, %v4944_v22  ;;  %v2026_v31 = vrot.slane %v1965_v43, %v4948_v25  ;;  %v2108_v56 = vrot.slane %v1985_v47, %v4948_v25 }
 0x23e   :  { %v2158_v33 = vsel %vm395_vm2, %v2002_v27, %v2084_v51  ;;  %v2160_v57 = vsel %vm395_vm2, %v2010_v1, %v2092_v52  ;;  %v2157_v35 = vsel %vm395_vm2, %v1998_v49, %v2080_v53  ;;  %v2159_v44 = vsel %vm395_vm2, %v2006_v50, %v2088_v54  ;;  %v4671_v51 = vld [vmem:[%s5899_s3 + $0x598] sm:$0xff]   ;;  %v4674_v53 = vld [vmem:[%s5899_s3 + $0x520] sm:$0xff]  }
 0x23f   :  { %v2174_v58 = vpack.c.bf16 %v2158_v33, %v2158_v33  ;;  %v2176_v59 = vpack.c.bf16 %v2160_v57, %v2160_v57  ;;  %v2173_v60 = vpack.c.bf16 %v2157_v35, %v2157_v35  ;;  %v2175_v61 = vpack.c.bf16 %v2159_v44, %v2159_v44  ;;  %v4675_v54 = vld [vmem:[%s5899_s3 + $0x5a0] sm:$0xff]   ;;  %v4680_v33 = vld [vmem:[%s5899_s3 + $0x570] sm:$0xff]  }
 0x240   :  { %v2162_v0 = vsel %vm395_vm2, %v2018_v55, %v2100_v12  ;;  %v2164_v2 = vsel %vm395_vm2, %v2026_v31, %v2108_v56  ;;  %v2014_v3 = vrot.slane %v1965_v43, %v4956_v28  ;;  %v2096_v4 = vrot.slane %v1985_v47, %v4956_v28  ;;  %v4676_v55 = vld [vmem:[%s5899_s3 + $0x568] sm:$0xff]   ;;  %v4681_v57 = vld [vmem:[%s5899_s3 + $0x5f0] sm:$0xff]  }
 0x241   :  { %3254 = vmatprep.mubr.bf16.mxu0 %v2174_v58  ;;  %3294 = vmatprep.mubr.bf16.mxu1 %v2176_v59  ;;  %v2178_v5 = vpack.c.bf16 %v2162_v0, %v2162_v0  ;;  %v2180_v6 = vpack.c.bf16 %v2164_v2, %v2164_v2  ;;  %v2022_v9 = vrot.slane %v1965_v43, %v4958_v29  ;;  %v4677_v12 = vld [vmem:[%s5899_s3 + $0x5e8] sm:$0xff]   ;;  %v4682_v35 = vld [vmem:[%s5899_s3 + $0x530] sm:$0xff]   ;;  %v4684_v58 = vld [vmem:[%s5899_s3 + $0x578] sm:$0xff]  }
 0x242   :  { %3255 = vmatmul.mubr.bf16.vlgmr.msra.gmra.mrb[24].mxu0 %v2173_v60  ;;  %3295 = vmatmul.mubr.bf16.vlgmr.msra.gmra.mrb[24].mxu1 %v2175_v61  ;;  %v5538_v10 = vsel %vm395_vm2, %v2014_v3, %v2096_v4  ;;  %v2104_v11 = vrot.slane %v1985_v47, %v4958_v29  ;;  %v2034_v13 = vrot.slane %v5498_v45, %v4936_v14  ;;  %v4678_v31 = vld [vmem:[%s5899_s3 + $0x528] sm:$0xff]   ;;  %v4683_v44 = vld [vmem:[%s5899_s3 + $0x5b0] sm:$0xff]   ;;  %v4685_v59 = vld [vmem:[%s5899_s3 + $0x5f8] sm:$0xff]  }
 0x243   :  { %4330 = vmatpush3.bf16.msra.mxu0 %v4658_v62  ;;  %4352 = vmatpush3.bf16.msra.mxu1 %v4659_v63  ;;  %v2116_v18 = vrot.slane %v5502_v48, %v4936_v14  ;;  %v2042_v19 = vrot.slane %v5498_v45, %v4938_v15  ;;  %v2124_v32 = vrot.slane %v5502_v48, %v4938_v15  ;;  %v4679_v56 = vld [vmem:[%s5899_s3 + $0x5a8] sm:$0xff]   ;;  %v4686_v60 = vld [vmem:[%s5899_s3 + $0x538] sm:$0xff]   ;;  %v4688_v62 = vld [vmem:[%s5899_s3 + $0x640] sm:$0xff]  }
 0x244   :  { %3334 = vmatprep.mubr.bf16.mxu0 %v2178_v5  ;;  %3374 = vmatprep.mubr.bf16.mxu1 %v2180_v6  ;;  %v5560_v30 = vsel %vm395_vm2, %v2022_v9, %v2104_v11  ;;  %v2030_v14 = vrot.slane %v5498_v45, %v4940_v20  ;;  %v2112_v36 = vrot.slane %v5502_v48, %v4940_v20  ;;  %v4687_v61 = vld [vmem:[%s5899_s3 + $0x5b8] sm:$0xff]   ;;  %v4689_v63 = vld [vmem:[%s5899_s3 + $0x6c0] sm:$0xff]   ;;  %v4692_v6 = vld [vmem:[%s5899_s3 + $0x648] sm:$0xff]  }
 0x245   :  { %4331 = vmatprep.subr.bf16.mxu0 %v4660_v8  ;;  %4353 = vmatprep.subr.bf16.mxu1 %v4661_v7  ;;  %v5567_v34 = vsel %vm395_vm2, %v2034_v13, %v2116_v18  ;;  %v5572_v37 = vsel %vm395_vm2, %v2042_v19, %v2124_v32  ;;  %v2038_v38 = vrot.slane %v5498_v45, %v4942_v21  ;;  %v4690_v0 = vld [vmem:[%s5899_s3 + $0x600] sm:$0xff]   ;;  %v4693_v8 = vld [vmem:[%s5899_s3 + $0x6c8] sm:$0xff]   ;;  %v4696_v11 = vld [vmem:[%s5899_s3 + $0x650] sm:$0xff]  }
 0x246   :  { %v2120_v15 = vrot.slane %v5502_v48, %v4942_v21  ;;  %v5585_v20 = vsel %vm395_vm2, %v2030_v14, %v2112_v36  ;;  %v2050_v26 = vrot.slane %v5498_v45, %v4944_v22  ;;  %v4668_v21 = vld [vmem:[%s5899_s3 + $0x558] sm:$0xff]   ;;  %v2132_v42 = vrot.slane %v5502_v48, %v4944_v22  ;;  %v4691_v4 = vld [vmem:[%s5899_s3 + $0x680] sm:$0xff]   ;;  %v4694_v9 = vld [vmem:[%s5899_s3 + $0x608] sm:$0xff]  }
 0x247   :  { %4332 = vmatpush3.bf16.msra.mxu0 %v4662_v16  ;;  %4354 = vmatpush3.bf16.msra.mxu1 %v4663_v17  ;;  %v2058_v43 = vrot.slane %v5498_v45, %v4948_v25  ;;  %v2140_v47 = vrot.slane %v5502_v48, %v4948_v25  ;;  %v2046_v27 = vrot.slane %v5498_v45, %v4956_v28  ;;  %v4670_v25 = vld [vmem:[%s5899_s3 + $0x518] sm:$0xff]   ;;  %v4697_v13 = vld [vmem:[%s5899_s3 + $0x6d0] sm:$0xff]   ;;  %v4705_v32 = vld [vmem:[%s5899_s3 + $0x6e0] sm:$0xff]  }
 0x248   :  { %4333 = vmatprep.subr.bf16.mxu0 %v4664_v23  ;;  %4355 = vmatprep.subr.bf16.mxu1 %v4665_v24  ;;  %v5596_v41 = vsel %vm395_vm2, %v2038_v38, %v2120_v15  ;;  %v5607_v1 = vsel %vm395_vm2, %v2050_v26, %v2132_v42  ;;  %v2128_v49 = vrot.slane %v5502_v48, %v4956_v28  ;;  %v4672_v28 = vld [vmem:[%s5899_s3 + $0x560] sm:$0xff]   ;;  %v4698_v16 = vld [vmem:[%s5899_s3 + $0x610] sm:$0xff]   ;;  %v4700_v18 = vld [vmem:[%s5899_s3 + $0x658] sm:$0xff]  }
 0x249   :  { %v2054_v50 = vrot.slane %v5498_v45, %v4958_v29  ;;  %v2136_v22 = vrot.slane %v5502_v48, %v4958_v29  ;;  %v5622_v52 = vsel %vm395_vm2, %v2058_v43, %v2140_v47  ;;  %v4673_v29 = vld [vmem:[%s5899_s3 + $0x5e0] sm:$0xff]   ;;  %v2177_v2 = vpack.c.bf16 %v5538_v10, %v5538_v10  ;;  %v4695_v10 = vld [vmem:[%s5899_s3 + $0x688] sm:$0xff]   ;;  %v4699_v17 = vld [vmem:[%s5899_s3 + $0x690] sm:$0xff]  }
 0x24a   :  { %v5631_v45 = vsel %vm395_vm2, %v2046_v27, %v2128_v49  ;;  %v2179_v3 = vpack.c.bf16 %v5560_v30, %v5560_v30  ;;  %v2182_v5 = vpack.c.bf16 %v5567_v34, %v5567_v34  ;;  %v2184_v7 = vpack.c.bf16 %v5572_v37, %v5572_v37  ;;  %v4701_v19 = vld [vmem:[%s5899_s3 + $0x6d8] sm:$0xff]   ;;  %v4704_v30 = vld [vmem:[%s5899_s3 + $0x660] sm:$0xff]   ;;  %v4708_v36 = vld [vmem:[%s5899_s3 + $0x668] sm:$0xff]  }
 0x24b   :  { %4334 = vmatpush3.bf16.msra.mxu0 %v4666_v46  ;;  %4356 = vmatpush3.bf16.msra.mxu1 %v4667_v39  ;;  %v5634_v48 = vsel %vm395_vm2, %v2054_v50, %v2136_v22  ;;  %v4702_v23 = vld [vmem:[%s5899_s3 + $0x618] sm:$0xff]   ;;  %v4706_v14 = vld [vmem:[%s5899_s3 + $0x620] sm:$0xff]   ;;  %v4709_v37 = vld [vmem:[%s5899_s3 + $0x6e8] sm:$0xff]   ;;  %v2181_v22 = vpack.c.bf16 %v5585_v20, %v5585_v20 }
 0x24c   :  { %4335 = vmatprep.subr.bf16.mxu0 %v4668_v21  ;;  %4357 = vmatprep.subr.bf16.mxu1 %v4669_v40  ;;  %v4703_v24 = vld [vmem:[%s5899_s3 + $0x698] sm:$0xff]   ;;  %v4707_v34 = vld [vmem:[%s5899_s3 + $0x6a0] sm:$0xff]   ;;  %v4710_v38 = vld [vmem:[%s5899_s3 + $0x628] sm:$0xff]  }
 0x24d   :  { %v4711_v15 = vld [vmem:[%s5899_s3 + $0x6a8] sm:$0xff]   ;;  %v4712_v46 = vld [vmem:[%s5899_s3 + $0x670] sm:$0xff]   ;;  %v4716_v40 = vld [vmem:[%s5899_s3 + $0x678] sm:$0xff]  }
 0x24e   :  { %v4713_v39 = vld [vmem:[%s5899_s3 + $0x6f0] sm:$0xff]   ;;  %v4717_v42 = vld [vmem:[%s5899_s3 + $0x6f8] sm:$0xff]   ;;  %v4720_v27 = vld [vmem:[%s5899_s3 + $0x740] sm:$0xff]  }
 0x24f   :  { %4336 = vmatpush3.bf16.msra.mxu0 %v4670_v25  ;;  %4358 = vmatpush3.bf16.msra.mxu1 %v4671_v51  ;;  %v4714_v26 = vld [vmem:[%s5899_s3 + $0x630] sm:$0xff]   ;;  %v4718_v43 = vld [vmem:[%s5899_s3 + $0x638] sm:$0xff]   ;;  %v4721_v49 = vld [vmem:[%s5899_s3 + $0x7c0] sm:$0xff]   ;;  %v2183_v51 = vpack.c.bf16 %v5596_v41, %v5596_v41 }
 0x250   :  { %4337 = vmatprep.subr.bf16.mxu0 %v4672_v28  ;;  %4359 = vmatprep.subr.bf16.mxu1 %v4673_v29  ;;  %v4715_v21 = vld [vmem:[%s5899_s3 + $0x6b0] sm:$0xff]   ;;  %v4719_v47 = vld [vmem:[%s5899_s3 + $0x6b8] sm:$0xff]   ;;  %v4722_v50 = vld [vmem:[%s5899_s3 + $0x700] sm:$0xff]   ;;  %v2186_v29 = vpack.c.bf16 %v5607_v1, %v5607_v1 }
 0x251   :  { %v4723_v25 = vld [vmem:[%s5899_s3 + $0x780] sm:$0xff]   ;;  %v4724_v28 = vld [vmem:[%s5899_s3 + $0x748] sm:$0xff]   ;;  %v4728_v1 = vld [vmem:[%s5899_s3 + $0x750] sm:$0xff]  }
 0x252   :  { %v4725_v20 = vld [vmem:[%s5899_s3 + $0x7c8] sm:$0xff]  }
 0x253   :  { %4338 = vmatpush3.bf16.msra.mxu0 %v4674_v53  ;;  %4360 = vmatpush3.bf16.msra.mxu1 %v4675_v54  ;;  %v2188_v53 = vpack.c.bf16 %v5622_v52, %v5622_v52  ;;  %v4726_v41 = vld [vmem:[%s5899_s3 + $0x708] sm:$0xff]   ;;  %v4729_v52 = vld [vmem:[%s5899_s3 + $0x7d0] sm:$0xff]  }
 0x254   :  { %4339 = vmatprep.subr.bf16.mxu0 %v4676_v55  ;;  %4361 = vmatprep.subr.bf16.mxu1 %v4677_v12  ;;  %v4727_v54 = vld [vmem:[%s5899_s3 + $0x788] sm:$0xff]   ;;  %v4730_v55 = vld [vmem:[%s5899_s3 + $0x710] sm:$0xff]  }
 0x255   :  { %v4731_v12 = vld [vmem:[%s5899_s3 + $0x790] sm:$0xff]  }
 0x257   :  { %4340 = vmatpush3.bf16.msra.mxu0 %v4678_v31  ;;  %4362 = vmatpush3.bf16.msra.mxu1 %v4679_v56  ;;  %v4732_v31 = vld [vmem:[%s5899_s3 + $0x758] sm:$0xff]  }
 0x258   :  { %4341 = vmatprep.subr.bf16.mxu0 %v4680_v33  ;;  %4363 = vmatprep.subr.bf16.mxu1 %v4681_v57  ;;  %v4733_v56 = vld [vmem:[%s5899_s3 + $0x7d8] sm:$0xff]  }
 0x259   :  { %v4734_v33 = vld [vmem:[%s5899_s3 + $0x718] sm:$0xff]  }
 0x25a   :  { %v4735_v57 = vld [vmem:[%s5899_s3 + $0x798] sm:$0xff]  }
 0x25b   :  { %4342 = vmatpush3.bf16.msra.mxu0 %v4682_v35  ;;  %4364 = vmatpush3.bf16.msra.mxu1 %v4683_v44  ;;  %v4736_v35 = vld [vmem:[%s5899_s3 + $0x760] sm:$0xff]  }
 0x25c   :  { %4343 = vmatprep.subr.bf16.mxu0 %v4684_v58  ;;  %4365 = vmatprep.subr.bf16.mxu1 %v4685_v59  ;;  %v4737_v44 = vld [vmem:[%s5899_s3 + $0x7e0] sm:$0xff]  }
 0x25d   :  { %v4738_v58 = vld [vmem:[%s5899_s3 + $0x720] sm:$0xff]  }
 0x25e   :  { %v4739_v59 = vld [vmem:[%s5899_s3 + $0x7a0] sm:$0xff]  }
 0x25f   :  { %4344 = vmatpush3.bf16.msra.mxu0 %v4686_v60  ;;  %4366 = vmatpush3.bf16.msra.mxu1 %v4687_v61  ;;  %v4740_v60 = vld [vmem:[%s5899_s3 + $0x768] sm:$0xff]  }
 0x260   :  { %4373 = vmatprep.subr.bf16.mxu0 %v4688_v62  ;;  %4395 = vmatprep.subr.bf16.mxu1 %v4689_v63  ;;  %v4741_v61 = vld [vmem:[%s5899_s3 + $0x7e8] sm:$0xff]  }
 0x261   :  { %v4742_v62 = vld [vmem:[%s5899_s3 + $0x728] sm:$0xff]  }
 0x262   :  { %3335 = vmatmul.mubr.bf16.vlgmr.msra.gmra.mrb[28].mxu0 %v2177_v2  ;;  %3375 = vmatmul.mubr.bf16.vlgmr.msra.gmra.mrb[28].mxu1 %v2179_v3  ;;  %v4743_v63 = vld [vmem:[%s5899_s3 + $0x7a8] sm:$0xff]   ;;  %v4745_v2 = vld [vmem:[%s5899_s3 + $0x7f0] sm:$0xff]  }
 0x263   :  { %4374 = vmatpush3.bf16.msra.mxu0 %v4690_v0  ;;  %3414 = vmatprep.mubr.bf16.mxu0 %v2182_v5  ;;  %v4744_v0 = vld [vmem:[%s5899_s3 + $0x770] sm:$0xff]   ;;  %v4748_v5 = vld [vmem:[%s5899_s3 + $0x778] sm:$0xff]  }
 0x264   :  { %4396 = vmatpush3.bf16.msra.mxu1 %v4691_v4  ;;  %3454 = vmatprep.mubr.bf16.mxu1 %v2184_v7  ;;  %v4746_v3 = vld [vmem:[%s5899_s3 + $0x730] sm:$0xff]   ;;  %v4751_v7 = vld [vmem:[%s5899_s3 + $0x7b8] sm:$0xff]  }
 0x265   :  { %4375 = vmatprep.subr.bf16.mxu0 %v4692_v6  ;;  %4397 = vmatprep.subr.bf16.mxu1 %v4693_v8  ;;  %v4747_v4 = vld [vmem:[%s5899_s3 + $0x7b0] sm:$0xff]   ;;  %v4749_v6 = vld [vmem:[%s5899_s3 + $0x7f8] sm:$0xff]  }
 0x266   :  { %v4750_v8 = vld [vmem:[%s5899_s3 + $0x738] sm:$0xff]  }
 0x267   :  { %4376 = vmatpush3.bf16.msra.mxu0 %v4694_v9  ;;  %v2185_v9 = vpack.c.bf16 %v5631_v45, %v5631_v45 }
 0x268   :  { %4398 = vmatpush3.bf16.msra.mxu1 %v4695_v10  ;;  %4377 = vmatprep.subr.bf16.mxu0 %v4696_v11  ;;  %v2187_v10 = vpack.c.bf16 %v5634_v48, %v5634_v48 }
 0x269   :  { %4399 = vmatprep.subr.bf16.mxu1 %v4697_v13 }
 0x26b   :  { %4378 = vmatpush3.bf16.msra.mxu0 %v4698_v16  ;;  %v3979_v16 = vld [vmem:[%s5901_s4 + $0x1] ss:$0 sm:$0xff] }
 0x26c   :  { %4400 = vmatpush3.bf16.msra.mxu1 %v4699_v17  ;;  %4379 = vmatprep.subr.bf16.mxu0 %v4700_v18 }
 0x26d   :  { %4401 = vmatprep.subr.bf16.mxu1 %v4701_v19 }
 0x26f   :  { %4380 = vmatpush3.bf16.msra.mxu0 %v4702_v23 }
 0x270   :  { %4402 = vmatpush3.bf16.msra.mxu1 %v4703_v24  ;;  %4381 = vmatprep.subr.bf16.mxu0 %v4704_v30 }
 0x271   :  { %4403 = vmatprep.subr.bf16.mxu1 %v4705_v32 }
 0x273   :  { %4382 = vmatpush3.bf16.msra.mxu0 %v4706_v14 }
 0x274   :  { %4404 = vmatpush3.bf16.msra.mxu1 %v4707_v34  ;;  %4383 = vmatprep.subr.bf16.mxu0 %v4708_v36 }
 0x275   :  { %4405 = vmatprep.subr.bf16.mxu1 %v4709_v37 }
 0x277   :  { %4384 = vmatpush3.bf16.msra.mxu0 %v4710_v38 }
 0x278   :  { %4406 = vmatpush3.bf16.msra.mxu1 %v4711_v15  ;;  %4385 = vmatprep.subr.bf16.mxu0 %v4712_v46 }
 0x279   :  { %4407 = vmatprep.subr.bf16.mxu1 %v4713_v39 }
 0x27b   :  { %4386 = vmatpush3.bf16.msra.mxu0 %v4714_v26 }
 0x27c   :  { %4408 = vmatpush3.bf16.msra.mxu1 %v4715_v21  ;;  %4387 = vmatprep.subr.bf16.mxu0 %v4716_v40 }
 0x27d   :  { %4409 = vmatprep.subr.bf16.mxu1 %v4717_v42 }
 0x27f   :  { %4388 = vmatpush3.bf16.msra.mxu0 %v4718_v43 }
 0x280   :  { %4410 = vmatpush3.bf16.msra.mxu1 %v4719_v47  ;;  %4417 = vmatprep.subr.bf16.mxu0 %v4720_v27 }
 0x281   :  { %4439 = vmatprep.subr.bf16.mxu1 %v4721_v49 }
 0x282   :  { %3415 = vmatmul.mubr.bf16.vlgmr.msra.gmra.mrb[32].mxu0 %v2181_v22 }
 0x283   :  { %3455 = vmatmul.mubr.bf16.vlgmr.msra.gmra.mrb[32].mxu1 %v2183_v51  ;;  %4418 = vmatpush3.bf16.msra.mxu0 %v4722_v50 }
 0x284   :  { %3494 = vmatprep.mubr.bf16.mxu0 %v2186_v29  ;;  %4440 = vmatpush3.bf16.msra.mxu1 %v4723_v25 }
 0x285   :  { %3534 = vmatprep.mubr.bf16.mxu1 %v2188_v53  ;;  %4419 = vmatprep.subr.bf16.mxu0 %v4724_v28 }
 0x286   :  { %4441 = vmatprep.subr.bf16.mxu1 %v4725_v20 }
 0x287   :  { %4420 = vmatpush3.bf16.msra.mxu0 %v4726_v41 }
 0x288   :  { %4442 = vmatpush3.bf16.msra.mxu1 %v4727_v54  ;;  %4421 = vmatprep.subr.bf16.mxu0 %v4728_v1 }
 0x289   :  { %4443 = vmatprep.subr.bf16.mxu1 %v4729_v52 }
 0x28b   :  { %4422 = vmatpush3.bf16.msra.mxu0 %v4730_v55 }
 0x28c   :  { %4444 = vmatpush3.bf16.msra.mxu1 %v4731_v12  ;;  %4423 = vmatprep.subr.bf16.mxu0 %v4732_v31 }
 0x28d   :  { %4445 = vmatprep.subr.bf16.mxu1 %v4733_v56 }
 0x28f   :  { %4424 = vmatpush3.bf16.msra.mxu0 %v4734_v33 }
 0x290   :  { %4446 = vmatpush3.bf16.msra.mxu1 %v4735_v57  ;;  %4425 = vmatprep.subr.bf16.mxu0 %v4736_v35 }
 0x291   :  { %4447 = vmatprep.subr.bf16.mxu1 %v4737_v44 }
 0x293   :  { %4426 = vmatpush3.bf16.msra.mxu0 %v4738_v58 }
 0x294   :  { %4448 = vmatpush3.bf16.msra.mxu1 %v4739_v59  ;;  %4427 = vmatprep.subr.bf16.mxu0 %v4740_v60 }
 0x295   :  { %4449 = vmatprep.subr.bf16.mxu1 %v4741_v61 }
 0x297   :  { %4428 = vmatpush3.bf16.msra.mxu0 %v4742_v62 }
 0x298   :  { %4450 = vmatpush3.bf16.msra.mxu1 %v4743_v63  ;;  %4429 = vmatprep.subr.bf16.mxu0 %v4744_v0 }
 0x299   :  { %4451 = vmatprep.subr.bf16.mxu1 %v4745_v2 }
 0x29b   :  { %4430 = vmatpush3.bf16.msra.mxu0 %v4746_v3 }
 0x29c   :  { %4452 = vmatpush3.bf16.msra.mxu1 %v4747_v4  ;;  %4431 = vmatprep.subr.bf16.mxu0 %v4748_v5 }
 0x29d   :  { %4453 = vmatprep.subr.bf16.mxu1 %v4749_v6 }
 0x29f   :  { %4432 = vmatpush3.bf16.msra.mxu0 %v4750_v8 }
 0x2a0   :  { %4454 = vmatpush3.bf16.msra.mxu1 %v4751_v7 }
 0x2a2   :  { %3495 = vmatmul.mubr.bf16.vlgmr.msra.gmra.mrb[36].mxu0 %v2185_v9 }
 0x2a3   :  { %3535 = vmatmul.mubr.bf16.vlgmr.msra.gmra.mrb[36].mxu1 %v2187_v10 }
 0x315   :  { %v4301_v11 = vpop.f32.mrb[24].mxu0  ;;  %v4323_v13 = vpop.f32.mrb[24].mxu1 }
 0x316   :  { %v4302_v17 = vpop.f32.mrb[25].mxu0  ;;  %v4324_v18 = vpop.f32.mrb[25].mxu1 }
 0x317   :  { %v4303_v19 = vadd.f32 %v4302_v17, %v4301_v11  ;;  %v4325_v23 = vadd.f32 %v4324_v18, %v4323_v13  ;;  %v4304_v24 = vpop.f32.mrb[26].mxu0  ;;  %v4326_v30 = vpop.f32.mrb[26].mxu1 }
 0x318   :  { %v4305_v32 = vpop.f32.mrb[27].mxu0  ;;  %v4327_v14 = vpop.f32.mrb[27].mxu1 }
 0x319   :  { %v3257_v45 = vadd.f32 %v4303_v19, %v3979_v16 }
 0x31b   :  { %v3297_v34 = vadd.f32 %v4325_v23, %v3257_v45 }
 0x335   :  { %v4345_v36 = vpop.f32.mrb[28].mxu0  ;;  %v4367_v48 = vpop.f32.mrb[28].mxu1 }
 0x336   :  { %v4346_v37 = vpop.f32.mrb[29].mxu0  ;;  %v4368_v38 = vpop.f32.mrb[29].mxu1 }
 0x337   :  { %v4347_v15 = vadd.f32 %v4346_v37, %v4345_v36  ;;  %v4369_v46 = vadd.f32 %v4368_v38, %v4367_v48  ;;  %v4348_v39 = vpop.f32.mrb[30].mxu0  ;;  %v4370_v26 = vpop.f32.mrb[30].mxu1 }
 0x338   :  { %v4349_v21 = vpop.f32.mrb[31].mxu0  ;;  %v4371_v40 = vpop.f32.mrb[31].mxu1 }
 0x339   :  { %v3337_v42 = vadd.f32 %v4347_v15, %v3297_v34 }
 0x33b   :  { %v3377_v43 = vadd.f32 %v4369_v46, %v3337_v42 }
 0x355   :  { %v4389_v47 = vpop.f32.mrb[32].mxu0 }
 0x356   :  { %v4411_v27 = vpop.f32.mrb[32].mxu1  ;;  %v4390_v49 = vpop.f32.mrb[33].mxu0 }
 0x357   :  { %v4391_v50 = vadd.f32 %v4390_v49, %v4389_v47  ;;  %v4412_v22 = vpop.f32.mrb[33].mxu1  ;;  %v4392_v25 = vpop.f32.mrb[34].mxu0 }
 0x358   :  { %v4413_v51 = vadd.f32 %v4412_v22, %v4411_v27  ;;  %v4414_v28 = vpop.f32.mrb[34].mxu1  ;;  %v4393_v29 = vpop.f32.mrb[35].mxu0 }
 0x359   :  { %v3417_v20 = vadd.f32 %v4391_v50, %v3377_v43  ;;  %v4415_v53 = vpop.f32.mrb[35].mxu1 }
 0x35b   :  { %v3457_v41 = vadd.f32 %v4413_v51, %v3417_v20 }
 0x375   :  { %v4433_v54 = vpop.f32.mrb[36].mxu0 }
 0x376   :  { %v4455_v1 = vpop.f32.mrb[36].mxu1  ;;  %v4434_v52 = vpop.f32.mrb[37].mxu0 }
 0x377   :  { %v4435_v55 = vadd.f32 %v4434_v52, %v4433_v54  ;;  %v4456_v12 = vpop.f32.mrb[37].mxu1  ;;  %v4436_v31 = vpop.f32.mrb[38].mxu0 }
 0x378   :  { %v4457_v56 = vadd.f32 %v4456_v12, %v4455_v1  ;;  %v4458_v33 = vpop.f32.mrb[38].mxu1  ;;  %v4437_v57 = vpop.f32.mrb[39].mxu0 }
 0x379   :  { %v3497_v35 = vadd.f32 %v4435_v55, %v3457_v41  ;;  %v4459_v44 = vpop.f32.mrb[39].mxu1 }
 0x37b   :  { %v3537_v58 = vadd.f32 %v4457_v56, %v3497_v35 }
 0x37d   :  { %v3542_v59 = vmax.f32 %v3537_v58, 0.0 }
 0x37f   :  { %4108 = vst.msk [vmem:[%s5902_s5 + $0x2] sm:$0x3] %vm1780_vm3, %v3542_v59 }

</bundles_post_ra>
